<compile_context>
chip_gen: v5e
topology: v5e:2x2
jax: 0.10.0
libtpu: 0.0.40
codegen_flags: <defaults>
</compile_context>

<pallas_src>
import functools

import jax
import jax.numpy as jnp
from jax import lax
from jax.experimental import pallas as pl
from jax.experimental.pallas import tpu as pltpu

NUM_INPUTS = 28 * 28
NUM_HIDDENS1 = 256
NUM_HIDDENS2 = 256
NUM_OUTPUTS = 10
OUT_PAD = 128  # lane-dense padded output width; sliced back to NUM_OUTPUTS

# 32-bit mixing constants (murmur3 / golden-ratio), pre-wrapped into int32 range.
_P1 = -1640531535  # 0x9E3779B1
_P2 = -2048144777  # 0x85EBCA77
_P3 = -1028477379  # 0xC2B2AE3D
_M1 = -2048144789  # 0x85EBCA6B
_M2 = -1028477387  # 0xC2B2AE35


def _round_up(n, m):
    return ((n + m - 1) // m) * m


def _mlp_dropout_kernel(seed_ref, x_ref, w1_ref, b1_ref, w2_ref, b2_ref,
                        w3_ref, b3_ref, out_ref, *, p1, p2, training):
    """One batch tile of the fused MLP. x_ref: (TB, 784) bf16; out_ref: (TB, 128) f32."""
    tb = x_ref.shape[0]
    row0 = pl.program_id(0) * tb  # global row offset -> per-tile-unique masks

    def _bits24(shape, salt):
        # Counter-based hash PRNG: (global_row, col, seed, salt) -> 24 uniform bits.
        # Pure int32 VPU ops (no pltpu.prng_*), so it lowers on TPU and in interpret.
        r = lax.broadcasted_iota(jnp.int32, shape, 0) + row0
        c = lax.broadcasted_iota(jnp.int32, shape, 1)
        h = (r * jnp.int32(_P1) + c * jnp.int32(_P2)
             + seed_ref[0] * jnp.int32(_P3) + jnp.int32(salt))
        h = h ^ ((h & 0x7FFFFFFF) >> 16)
        h = h * jnp.int32(_M1)
        h = h ^ ((h & 0x7FFFFFFF) >> 13)
        h = h * jnp.int32(_M2)
        h = h ^ ((h & 0x7FFFFFFF) >> 16)
        return (h & 0x7FFFFFFF) >> 7  # int32 uniform in [0, 2**24)

    def _dropout(h, p, salt):
        # Mirrors dropout_layer(): static special cases for p == 0 / p == 1,
        # inverted-dropout scaling by 1/(1-p). Integer-threshold compare
        # (keep iff bits >= round(p*2^24)) gives P(keep) = 1 - p with no
        # float-conversion VALU work.
        if (not training) or p == 0.0:
            return h
        if p == 1.0:
            return jnp.zeros_like(h)
        thresh = jnp.int32(min(int(round(p * (1 << 24))), (1 << 24) - 1))
        keep = _bits24(h.shape, salt) >= thresh
        return jnp.where(keep, h * jnp.float32(1.0 / (1.0 - p)), 0.0)

    x = x_ref[...]  # (TB, 784) bf16
    h1 = jnp.dot(x, w1_ref[...], preferred_element_type=jnp.float32) + b1_ref[...]
    h1 = _dropout(jnp.maximum(h1, 0.0), p1, salt=0x1234567)

    h2 = jnp.dot(h1.astype(jnp.bfloat16), w2_ref[...],
                 preferred_element_type=jnp.float32) + b2_ref[...]
    h2 = _dropout(jnp.maximum(h2, 0.0), p2, salt=0x7654321)

    out = jnp.dot(h2.astype(jnp.bfloat16), w3_ref[...],
                  preferred_element_type=jnp.float32) + b3_ref[...]
    out_ref[...] = out.astype(out_ref.dtype)


def net_forward(x, params, seed, *, is_training=True, dropout1=0.2, dropout2=0.5,
                block_batch=512):
    """Forward pass of Net. x: (B, 1, 28, 28) or anything flattening to (B, 784)."""
    assert 0.0 <= dropout1 <= 1.0 and 0.0 <= dropout2 <= 1.0
    w1, b1, w2, b2, w3, b3 = params

    x2 = x.reshape(-1, NUM_INPUTS)
    batch = x2.shape[0]

    # Batch tile: multiple of 16 (bf16 sublane packing), capped at block_batch.
    # TB=512 fits comfortably in VMEM on v5e/v6e/v7x (see header comment).
    tb = min(block_batch, _round_up(batch, 16))
    pad_batch = _round_up(batch, tb)

    x2 = x2.astype(jnp.bfloat16)
    if pad_batch != batch:
        x2 = jnp.pad(x2, ((0, pad_batch - batch), (0, 0)))

    # bf16 weights (MXU-native inputs), f32 biases; pad layer-3 to lane-dense width.
    w1b = w1.astype(jnp.bfloat16)
    w2b = w2.astype(jnp.bfloat16)
    w3b = jnp.pad(w3, ((0, 0), (0, OUT_PAD - NUM_OUTPUTS))).astype(jnp.bfloat16)
    b1f = b1.astype(jnp.float32)
    b2f = b2.astype(jnp.float32)
    b3f = jnp.pad(b3, ((0, 0), (0, OUT_PAD - NUM_OUTPUTS))).astype(jnp.float32)

    seed_arr = jnp.asarray([seed], dtype=jnp.int32)

    kernel = functools.partial(
        _mlp_dropout_kernel, p1=float(dropout1), p2=float(dropout2),
        training=bool(is_training))

    grid = (pad_batch // tb,)
    out_padded = pl.pallas_call(
        kernel,
        grid=grid,
        out_shape=jax.ShapeDtypeStruct((pad_batch, OUT_PAD), jnp.float32),
        in_specs=[
            # seed: whole array in SMEM
            pl.BlockSpec(memory_space=pltpu.MemorySpace.SMEM),
            # activation stream: batch-tiled, double-buffered by the pipeline
            pl.BlockSpec((tb, NUM_INPUTS), lambda i: (i, 0)),
            # weights / biases: full-array blocks, resident across the grid
            pl.BlockSpec((NUM_INPUTS, NUM_HIDDENS1), lambda i: (0, 0)),
            pl.BlockSpec((1, NUM_HIDDENS1), lambda i: (0, 0)),
            pl.BlockSpec((NUM_HIDDENS1, NUM_HIDDENS2), lambda i: (0, 0)),
            pl.BlockSpec((1, NUM_HIDDENS2), lambda i: (0, 0)),
            pl.BlockSpec((NUM_HIDDENS2, OUT_PAD), lambda i: (0, 0)),
            pl.BlockSpec((1, OUT_PAD), lambda i: (0, 0)),
        ],
        out_specs=pl.BlockSpec((tb, OUT_PAD), lambda i: (i, 0)),
        compiler_params=pltpu.CompilerParams(
            dimension_semantics=("parallel",)),  # shards tiles across v7x's 2 TCs
    )(seed_arr, x2, w1b, b1f, w2b, b2f, w3b, b3f)

    return out_padded[:batch, :NUM_OUTPUTS]


def init_params(key):
    """Deterministic parameter init (shapes mirror Net's nn.Linear layers, transposed)."""
    k1, k2, k3 = jax.random.split(key, 3)
    scale = 0.01
    w1 = scale * jax.random.normal(k1, (NUM_INPUTS, NUM_HIDDENS1), jnp.float32)
    b1 = jnp.zeros((1, NUM_HIDDENS1), jnp.float32)
    w2 = scale * jax.random.normal(k2, (NUM_HIDDENS1, NUM_HIDDENS2), jnp.float32)
    b2 = jnp.zeros((1, NUM_HIDDENS2), jnp.float32)
    w3 = scale * jax.random.normal(k3, (NUM_HIDDENS2, NUM_OUTPUTS), jnp.float32)
    b3 = jnp.zeros((1, NUM_OUTPUTS), jnp.float32)
    return (w1, b1, w2, b2, w3, b3)


def _reference_eval(x, params):
    """Pure-JAX f32 reference of the no-dropout (eval) forward pass."""
    w1, b1, w2, b2, w3, b3 = params
    h = jnp.maximum(x.reshape(-1, NUM_INPUTS) @ w1 + b1, 0.0)
    h = jnp.maximum(h @ w2 + b2, 0.0)
    return h @ w3 + b3


if __name__ == "__main__":
    root = jax.random.PRNGKey(0)
    k_params, k_x = jax.random.split(root)

    params = init_params(k_params)
    # Small MNIST-like NCHW batch; flattened to (B, 784) in the wrapper.
    x = jax.random.normal(k_x, (2, 1, 28, 28), jnp.float32)

    out_train = net_forward(x, params, seed=0, is_training=True,
                            dropout1=0.2, dropout2=0.5)
    out_eval = net_forward(x, params, seed=0, is_training=False)
    jax.block_until_ready((out_train, out_eval))

    assert out_train.shape == (2, NUM_OUTPUTS)
    assert out_eval.shape == (2, NUM_OUTPUTS)
    assert bool(jnp.all(jnp.isfinite(out_train)))
    assert bool(jnp.all(jnp.isfinite(out_eval)))

    # Eval path (deterministic) should match the f32 reference up to bf16 precision.
    ref = _reference_eval(x, params)
    assert jnp.allclose(out_eval, ref, atol=2e-2, rtol=2e-2)

    print("KERNEL_OK")
</pallas_src>

<mosaic_0001>
module attributes {stable_mosaic.version = 11 : i64} {
  func.func @_mlp_dropout_kernel(%arg0: i32, %arg1: memref<1xi32, #tpu.memory_space<smem>>, %arg2: memref<16x784xbf16, #tpu.memory_space<vmem>>, %arg3: memref<784x256xbf16, #tpu.memory_space<vmem>>, %arg4: memref<1x256xf32, #tpu.memory_space<vmem>>, %arg5: memref<256x256xbf16, #tpu.memory_space<vmem>>, %arg6: memref<1x256xf32, #tpu.memory_space<vmem>>, %arg7: memref<256x128xbf16, #tpu.memory_space<vmem>>, %arg8: memref<1x128xf32, #tpu.memory_space<vmem>>, %arg9: memref<16x128xf32, #tpu.memory_space<vmem>>) attributes {dimension_semantics = [#tpu.dimension_semantics<parallel>], iteration_bounds = array<i64: 1>, scalar_prefetch = 0 : i64, scratch_operands = 0 : i64, tpu.core_type = #tpu.core_type<tc>, window_params = [{transform_indices = @transform_0, window_bounds = array<i64: 1>}, {transform_indices = @transform_1, window_bounds = array<i64: 16, 784>}, {pipeline_mode = #tpu.pipeline_mode<synchronous>, transform_indices = @transform_2, window_bounds = array<i64: 784, 256>}, {pipeline_mode = #tpu.pipeline_mode<synchronous>, transform_indices = @transform_3, window_bounds = array<i64: 1, 256>}, {pipeline_mode = #tpu.pipeline_mode<synchronous>, transform_indices = @transform_4, window_bounds = array<i64: 256, 256>}, {pipeline_mode = #tpu.pipeline_mode<synchronous>, transform_indices = @transform_5, window_bounds = array<i64: 1, 256>}, {pipeline_mode = #tpu.pipeline_mode<synchronous>, transform_indices = @transform_6, window_bounds = array<i64: 256, 128>}, {pipeline_mode = #tpu.pipeline_mode<synchronous>, transform_indices = @transform_7, window_bounds = array<i64: 1, 128>}, {transform_indices = @transform_8, window_bounds = array<i64: 16, 128>}]} {
    %c16_i32 = arith.constant 16 : i32
    %0 = arith.muli %arg0, %c16_i32 : i32
    %c0 = arith.constant 0 : index
    %c0_0 = arith.constant 0 : index
    %1 = vector.load %arg2[%c0, %c0_0] : memref<16x784xbf16, #tpu.memory_space<vmem>>, vector<16x784xbf16>
    %c0_1 = arith.constant 0 : index
    %c0_2 = arith.constant 0 : index
    %2 = vector.load %arg3[%c0_1, %c0_2] : memref<784x256xbf16, #tpu.memory_space<vmem>>, vector<784x256xbf16>
    %cst = arith.constant dense<0.000000e+00> : vector<16x256xf32>
    %3 = tpu.matmul %1, %2, %cst {dimension_numbers = #tpu.dot_dimension_numbers<[1], [0], [0], [1], [0, 0, 1, 1], [], []>} : vector<16x784xbf16>, vector<784x256xbf16>, vector<16x256xf32> -> vector<16x256xf32>
    %c0_3 = arith.constant 0 : index
    %c0_4 = arith.constant 0 : index
    %4 = vector.load %arg4[%c0_3, %c0_4] : memref<1x256xf32, #tpu.memory_space<vmem>>, vector<1x256xf32>
    %5 = vector.broadcast %4 : vector<1x256xf32> to vector<16x256xf32>
    %6 = arith.addf %3, %5 : vector<16x256xf32>
    %cst_5 = arith.constant 0.000000e+00 : f32
    %7 = vector.broadcast %cst_5 : f32 to vector<16x256xf32>
    %8 = arith.maximumf %6, %7 : vector<16x256xf32>
    %9 = tpu.iota {dimensions = array<i32: 0>} : vector<16x256xi32>
    %10 = vector.broadcast %0 : i32 to vector<16x256xi32>
    %11 = arith.addi %9, %10 : vector<16x256xi32>
    %12 = tpu.iota {dimensions = array<i32: 1>} : vector<16x256xi32>
    %c-1640531535_i32 = arith.constant -1640531535 : i32
    %13 = vector.broadcast %c-1640531535_i32 : i32 to vector<16x256xi32>
    %14 = arith.muli %11, %13 : vector<16x256xi32>
    %c-2048144777_i32 = arith.constant -2048144777 : i32
    %15 = vector.broadcast %c-2048144777_i32 : i32 to vector<16x256xi32>
    %16 = arith.muli %12, %15 : vector<16x256xi32>
    %17 = arith.addi %14, %16 : vector<16x256xi32>
    %c0_6 = arith.constant 0 : index
    %18 = memref.load %arg1[%c0_6] : memref<1xi32, #tpu.memory_space<smem>>
    %c-1028477379_i32 = arith.constant -1028477379 : i32
    %19 = arith.muli %18, %c-1028477379_i32 : i32
    %20 = vector.broadcast %19 : i32 to vector<16x256xi32>
    %21 = arith.addi %17, %20 : vector<16x256xi32>
    %c19088743_i32 = arith.constant 19088743 : i32
    %22 = vector.broadcast %c19088743_i32 : i32 to vector<16x256xi32>
    %23 = arith.addi %21, %22 : vector<16x256xi32>
    %c2147483647_i32 = arith.constant 2147483647 : i32
    %24 = vector.broadcast %c2147483647_i32 : i32 to vector<16x256xi32>
    %25 = arith.andi %23, %24 : vector<16x256xi32>
    %c16_i32_7 = arith.constant 16 : i32
    %26 = vector.broadcast %c16_i32_7 : i32 to vector<16x256xi32>
    %27 = arith.shrsi %25, %26 : vector<16x256xi32>
    %28 = arith.xori %23, %27 : vector<16x256xi32>
    %c-2048144789_i32 = arith.constant -2048144789 : i32
    %29 = vector.broadcast %c-2048144789_i32 : i32 to vector<16x256xi32>
    %30 = arith.muli %28, %29 : vector<16x256xi32>
    %c2147483647_i32_8 = arith.constant 2147483647 : i32
    %31 = vector.broadcast %c2147483647_i32_8 : i32 to vector<16x256xi32>
    %32 = arith.andi %30, %31 : vector<16x256xi32>
    %c13_i32 = arith.constant 13 : i32
    %33 = vector.broadcast %c13_i32 : i32 to vector<16x256xi32>
    %34 = arith.shrsi %32, %33 : vector<16x256xi32>
    %35 = arith.xori %30, %34 : vector<16x256xi32>
    %c-1028477387_i32 = arith.constant -1028477387 : i32
    %36 = vector.broadcast %c-1028477387_i32 : i32 to vector<16x256xi32>
    %37 = arith.muli %35, %36 : vector<16x256xi32>
    %c2147483647_i32_9 = arith.constant 2147483647 : i32
    %38 = vector.broadcast %c2147483647_i32_9 : i32 to vector<16x256xi32>
    %39 = arith.andi %37, %38 : vector<16x256xi32>
    %c16_i32_10 = arith.constant 16 : i32
    %40 = vector.broadcast %c16_i32_10 : i32 to vector<16x256xi32>
    %41 = arith.shrsi %39, %40 : vector<16x256xi32>
    %42 = arith.xori %37, %41 : vector<16x256xi32>
    %c2147483647_i32_11 = arith.constant 2147483647 : i32
    %43 = vector.broadcast %c2147483647_i32_11 : i32 to vector<16x256xi32>
    %44 = arith.andi %42, %43 : vector<16x256xi32>
    %c7_i32 = arith.constant 7 : i32
    %45 = vector.broadcast %c7_i32 : i32 to vector<16x256xi32>
    %46 = arith.shrsi %44, %45 : vector<16x256xi32>
    %c3355443_i32 = arith.constant 3355443 : i32
    %47 = vector.broadcast %c3355443_i32 : i32 to vector<16x256xi32>
    %48 = arith.cmpi sge, %46, %47 : vector<16x256xi32>
    %cst_12 = arith.constant 1.250000e+00 : f32
    %49 = vector.broadcast %cst_12 : f32 to vector<16x256xf32>
    %50 = arith.mulf %8, %49 : vector<16x256xf32>
    %cst_13 = arith.constant 0.000000e+00 : f32
    %51 = vector.broadcast %cst_13 : f32 to vector<16x256xf32>
    %52 = arith.select %48, %50, %51 : vector<16x256xi1>, vector<16x256xf32>
    %53 = arith.truncf %52 : vector<16x256xf32> to vector<16x256xbf16>
    %c0_14 = arith.constant 0 : index
    %c0_15 = arith.constant 0 : index
    %54 = vector.load %arg5[%c0_14, %c0_15] : memref<256x256xbf16, #tpu.memory_space<vmem>>, vector<256x256xbf16>
    %cst_16 = arith.constant dense<0.000000e+00> : vector<16x256xf32>
    %55 = tpu.matmul %53, %54, %cst_16 {dimension_numbers = #tpu.dot_dimension_numbers<[1], [0], [0], [1], [0, 0, 1, 1], [], []>} : vector<16x256xbf16>, vector<256x256xbf16>, vector<16x256xf32> -> vector<16x256xf32>
    %c0_17 = arith.constant 0 : index
    %c0_18 = arith.constant 0 : index
    %56 = vector.load %arg6[%c0_17, %c0_18] : memref<1x256xf32, #tpu.memory_space<vmem>>, vector<1x256xf32>
    %57 = vector.broadcast %56 : vector<1x256xf32> to vector<16x256xf32>
    %58 = arith.addf %55, %57 : vector<16x256xf32>
    %cst_19 = arith.constant 0.000000e+00 : f32
    %59 = vector.broadcast %cst_19 : f32 to vector<16x256xf32>
    %60 = arith.maximumf %58, %59 : vector<16x256xf32>
    %61 = tpu.iota {dimensions = array<i32: 0>} : vector<16x256xi32>
    %62 = vector.broadcast %0 : i32 to vector<16x256xi32>
    %63 = arith.addi %61, %62 : vector<16x256xi32>
    %64 = tpu.iota {dimensions = array<i32: 1>} : vector<16x256xi32>
    %c-1640531535_i32_20 = arith.constant -1640531535 : i32
    %65 = vector.broadcast %c-1640531535_i32_20 : i32 to vector<16x256xi32>
    %66 = arith.muli %63, %65 : vector<16x256xi32>
    %c-2048144777_i32_21 = arith.constant -2048144777 : i32
    %67 = vector.broadcast %c-2048144777_i32_21 : i32 to vector<16x256xi32>
    %68 = arith.muli %64, %67 : vector<16x256xi32>
    %69 = arith.addi %66, %68 : vector<16x256xi32>
    %c0_22 = arith.constant 0 : index
    %70 = memref.load %arg1[%c0_22] : memref<1xi32, #tpu.memory_space<smem>>
    %c-1028477379_i32_23 = arith.constant -1028477379 : i32
    %71 = arith.muli %70, %c-1028477379_i32_23 : i32
    %72 = vector.broadcast %71 : i32 to vector<16x256xi32>
    %73 = arith.addi %69, %72 : vector<16x256xi32>
    %c124076833_i32 = arith.constant 124076833 : i32
    %74 = vector.broadcast %c124076833_i32 : i32 to vector<16x256xi32>
    %75 = arith.addi %73, %74 : vector<16x256xi32>
    %c2147483647_i32_24 = arith.constant 2147483647 : i32
    %76 = vector.broadcast %c2147483647_i32_24 : i32 to vector<16x256xi32>
    %77 = arith.andi %75, %76 : vector<16x256xi32>
    %c16_i32_25 = arith.constant 16 : i32
    %78 = vector.broadcast %c16_i32_25 : i32 to vector<16x256xi32>
    %79 = arith.shrsi %77, %78 : vector<16x256xi32>
    %80 = arith.xori %75, %79 : vector<16x256xi32>
    %c-2048144789_i32_26 = arith.constant -2048144789 : i32
    %81 = vector.broadcast %c-2048144789_i32_26 : i32 to vector<16x256xi32>
    %82 = arith.muli %80, %81 : vector<16x256xi32>
    %c2147483647_i32_27 = arith.constant 2147483647 : i32
    %83 = vector.broadcast %c2147483647_i32_27 : i32 to vector<16x256xi32>
    %84 = arith.andi %82, %83 : vector<16x256xi32>
    %c13_i32_28 = arith.constant 13 : i32
    %85 = vector.broadcast %c13_i32_28 : i32 to vector<16x256xi32>
    %86 = arith.shrsi %84, %85 : vector<16x256xi32>
    %87 = arith.xori %82, %86 : vector<16x256xi32>
    %c-1028477387_i32_29 = arith.constant -1028477387 : i32
    %88 = vector.broadcast %c-1028477387_i32_29 : i32 to vector<16x256xi32>
    %89 = arith.muli %87, %88 : vector<16x256xi32>
    %c2147483647_i32_30 = arith.constant 2147483647 : i32
    %90 = vector.broadcast %c2147483647_i32_30 : i32 to vector<16x256xi32>
    %91 = arith.andi %89, %90 : vector<16x256xi32>
    %c16_i32_31 = arith.constant 16 : i32
    %92 = vector.broadcast %c16_i32_31 : i32 to vector<16x256xi32>
    %93 = arith.shrsi %91, %92 : vector<16x256xi32>
    %94 = arith.xori %89, %93 : vector<16x256xi32>
    %c2147483647_i32_32 = arith.constant 2147483647 : i32
    %95 = vector.broadcast %c2147483647_i32_32 : i32 to vector<16x256xi32>
    %96 = arith.andi %94, %95 : vector<16x256xi32>
    %c7_i32_33 = arith.constant 7 : i32
    %97 = vector.broadcast %c7_i32_33 : i32 to vector<16x256xi32>
    %98 = arith.shrsi %96, %97 : vector<16x256xi32>
    %c8388608_i32 = arith.constant 8388608 : i32
    %99 = vector.broadcast %c8388608_i32 : i32 to vector<16x256xi32>
    %100 = arith.cmpi sge, %98, %99 : vector<16x256xi32>
    %cst_34 = arith.constant 2.000000e+00 : f32
    %101 = vector.broadcast %cst_34 : f32 to vector<16x256xf32>
    %102 = arith.mulf %60, %101 : vector<16x256xf32>
    %cst_35 = arith.constant 0.000000e+00 : f32
    %103 = vector.broadcast %cst_35 : f32 to vector<16x256xf32>
    %104 = arith.select %100, %102, %103 : vector<16x256xi1>, vector<16x256xf32>
    %105 = arith.truncf %104 : vector<16x256xf32> to vector<16x256xbf16>
    %c0_36 = arith.constant 0 : index
    %c0_37 = arith.constant 0 : index
    %106 = vector.load %arg7[%c0_36, %c0_37] : memref<256x128xbf16, #tpu.memory_space<vmem>>, vector<256x128xbf16>
    %cst_38 = arith.constant dense<0.000000e+00> : vector<16x128xf32>
    %107 = tpu.matmul %105, %106, %cst_38 {dimension_numbers = #tpu.dot_dimension_numbers<[1], [0], [0], [1], [0, 0, 1, 1], [], []>} : vector<16x256xbf16>, vector<256x128xbf16>, vector<16x128xf32> -> vector<16x128xf32>
    %c0_39 = arith.constant 0 : index
    %c0_40 = arith.constant 0 : index
    %108 = vector.load %arg8[%c0_39, %c0_40] : memref<1x128xf32, #tpu.memory_space<vmem>>, vector<1x128xf32>
    %109 = vector.broadcast %108 : vector<1x128xf32> to vector<16x128xf32>
    %110 = arith.addf %107, %109 : vector<16x128xf32>
    %c0_41 = arith.constant 0 : index
    %c0_42 = arith.constant 0 : index
    %111 = vector.load %arg9[%c0_41, %c0_42] : memref<16x128xf32, #tpu.memory_space<vmem>>, vector<16x128xf32>
    tpu.vector_store %arg9[%c0_41, %c0_42], %110 {strides = array<i32>} : memref<16x128xf32, #tpu.memory_space<vmem>>, vector<16x128xf32>,
    return
  }
  func.func @transform_0(%arg0: i32) -> i32 {
    %c0_i32 = arith.constant 0 : i32
    %c0_i32_0 = arith.constant 0 : i32
    return %c0_i32 : i32
  }
  func.func @transform_1(%arg0: i32) -> (i32, i32) {
    %c0_i32 = arith.constant 0 : i32
    %c0_i32_0 = arith.constant 0 : i32
    return %arg0, %c0_i32 : i32, i32
  }
  func.func @transform_2(%arg0: i32) -> (i32, i32) {
    %c0_i32 = arith.constant 0 : i32
    %c0_i32_0 = arith.constant 0 : i32
    %c0_i32_1 = arith.constant 0 : i32
    return %c0_i32, %c0_i32_0 : i32, i32
  }
  func.func @transform_3(%arg0: i32) -> (i32, i32) {
    %c0_i32 = arith.constant 0 : i32
    %c0_i32_0 = arith.constant 0 : i32
    %c0_i32_1 = arith.constant 0 : i32
    return %c0_i32, %c0_i32_0 : i32, i32
  }
  func.func @transform_4(%arg0: i32) -> (i32, i32) {
    %c0_i32 = arith.constant 0 : i32
    %c0_i32_0 = arith.constant 0 : i32
    %c0_i32_1 = arith.constant 0 : i32
    return %c0_i32, %c0_i32_0 : i32, i32
  }
  func.func @transform_5(%arg0: i32) -> (i32, i32) {
    %c0_i32 = arith.constant 0 : i32
    %c0_i32_0 = arith.constant 0 : i32
    %c0_i32_1 = arith.constant 0 : i32
    return %c0_i32, %c0_i32_0 : i32, i32
  }
  func.func @transform_6(%arg0: i32) -> (i32, i32) {
    %c0_i32 = arith.constant 0 : i32
    %c0_i32_0 = arith.constant 0 : i32
    %c0_i32_1 = arith.constant 0 : i32
    return %c0_i32, %c0_i32_0 : i32, i32
  }
  func.func @transform_7(%arg0: i32) -> (i32, i32) {
    %c0_i32 = arith.constant 0 : i32
    %c0_i32_0 = arith.constant 0 : i32
    %c0_i32_1 = arith.constant 0 : i32
    return %c0_i32, %c0_i32_0 : i32, i32
  }
  func.func @transform_8(%arg0: i32) -> (i32, i32) {
    %c0_i32 = arith.constant 0 : i32
    %c0_i32_0 = arith.constant 0 : i32
    return %arg0, %c0_i32 : i32, i32
  }
}

</mosaic_0001>

<bundles_post_ra>
// kernel: tpu_custom_call.1
= control target key start
LH: loop header
LB: loop body
LE: loop exit
PB: predicated region body
PF: predicated region fallthrough
CT: control target
= control target key end

     0   :  { %14 = vsyncpa [#allocation4], 0  ;;  %s2646_s0 = inlined_call_operand.<no memory space> [shape: s32[1], index: 0, kind: input, shape index: {}]   ;;  %s2647_s1 = inlined_call_operand.hbm [shape: bf16[16,784], index: 1, kind: input, shape index: {}]   ;;  %s2648_s2 = inlined_call_operand.hbm [shape: bf16[784,256], index: 2, kind: input, shape index: {}]   ;;  %s2649_s3 = inlined_call_operand.vmem [shape: f32[1,256], index: 3, kind: input, shape index: {}]   ;;  %s2650_s4 = inlined_call_operand.hbm [shape: bf16[256,256], index: 4, kind: input, shape index: {}]   ;;  %s2651_s5 = inlined_call_operand.vmem [shape: f32[1,256], index: 5, kind: input, shape index: {}]   ;;  %s2652_s6 = inlined_call_operand.hbm [shape: bf16[256,128], index: 6, kind: input, shape index: {}]   ;;  %s2653_s7 = inlined_call_operand.vmem [shape: f32[1,128], index: 7, kind: input, shape index: {}]   ;;  %s2654_s8 = inlined_call_operand.hbm [shape: f32[16,128], index: 8, kind: output, shape index: {}]  }
   0x1   :  { %15 = vsyncpa [#allocation7], 0 }
   0x2   :  { %16 = vsyncpa [#allocation10], 0  ;;  %s37_s29 = sshll.u32 %s2648_s2, 4  ;;  %s38_s29 = int_to_ptr.hbm [resolvable:$true] %s37_s29 }
   0x3   :  { %17 = vsyncpa [#allocation5], 0  ;;  %s2467_s30 = smov [#allocation6]   ;;  %s24_s12 = sshll.u32 %s2647_s1, 4  ;;  %s25_s12 = int_to_ptr.hbm [resolvable:$true] %s24_s12 }
   0x4   :  { %s39_s9 = sshll.u32 %s2467_s30, 4  ;;  %s2468_s13 = smov 128   ;;  %s40_s9 = int_to_ptr.vmem [resolvable:$true] %s39_s9 }
   0x5   :  { %s2469_s14 = smov 8   ;;  %s2470_s15 = smov [#allocation3]  }
   0x6   :  { %45 = dma.hbm_to_vmem [thread:$0]  %s38_s29, 12544, %s40_s9, [#allocation7], %s2468_s13, %s2468_s13, %s2469_s14  }
   0x7   :  { %s26_s16 = sshll.u32 %s2470_s15, 4  ;;  %s2471_s2 = smov 448   ;;  %s27_s16 = int_to_ptr.vmem [resolvable:$true] %s26_s16 }
   0x8   :  { %s2472_s17 = smov 28   ;;  %s52_s20 = sshll.u32 %s2650_s4, 4  ;;  %s53_s20 = int_to_ptr.hbm [resolvable:$true] %s52_s20 }
   0x9   :  { %32 = dma.hbm_to_vmem [thread:$0]  %s25_s12, 896, %s27_s16, [#allocation4], %s2471_s2, %s2471_s2, %s2472_s17  }
   0xa   :  { %s2473_s21 = smov [#allocation8]   ;;  %s67_s24 = sshll.u32 %s2652_s6, 4  ;;  %s68_s24 = int_to_ptr.hbm [resolvable:$true] %s67_s24 }
   0xb   :  { %s54_s1 = sshll.u32 %s2473_s21, 4  ;;  %s2474_s25 = smov [#allocation9]   ;;  %s55_s1 = int_to_ptr.vmem [resolvable:$true] %s54_s1 }
   0xc   :  { %60 = dma.hbm_to_vmem [thread:$0]  %s53_s20, 4096, %s55_s1, [#allocation7], %s2468_s13, %s2468_s13, %s2469_s14  }
   0xd   :  { %s69_s26 = sshll.u32 %s2474_s25, 4  ;;  %s2475_s27 = smov 64   ;;  %s70_s26 = int_to_ptr.vmem [resolvable:$true] %s69_s26 }
   0xe   :  { %s2476_s28 = smov 4  }
   0xf   :  { %75 = dma.hbm_to_vmem [thread:$0]  %s68_s24, 2048, %s70_s26, [#allocation10], %s2475_s27, %s2475_s27, %s2476_s28  }
  0x10   :  { %2459 = dma.done.wait [#allocation4], 896  }
  0x11   :  { %2460 = vsyncadd [#allocation4], 4294966400 }
  0x12   :  { %2461 = dma.done.wait [#allocation7], 16640  }
  0x13   :  { %2462 = vsyncadd [#allocation7], 4294950656 }
  0x14   :  { %2463 = dma.done.wait [#allocation10], 2048  }
  0x15   :  { %2464 = vsyncadd [#allocation10], 4294965248  ;;  %v1628_v0 = vld [vmem:[#allocation6 + $0x70] sm:$0xf]  ;;  %v2196_v1 = vld [vmem:[#allocation6 + $0x74] sm:$0xf0] }
  0x16   :  { %v1756_v2 = vld [vmem:[#allocation6 + $0x170] sm:$0xf]  ;;  %v1629_v3 = vor.u32 %v2196_v1, %v1628_v0  ;;  %v2228_v4 = vld [vmem:[#allocation6 + $0x174] sm:$0xf0]  ;;  %v1620_v11 = vld [vmem:[#allocation6 + $0x60] sm:$0xf] }
  0x17   :  { %v1820_v5 = vld [vmem:[#allocation6 + $0x1f0] sm:$0xf]  ;;  %v2244_v6 = vld [vmem:[#allocation6 + $0x1f4] sm:$0xf0]  ;;  %v1757_v7 = vor.u32 %v2228_v4, %v1756_v2  ;;  %v2194_v13 = vld [vmem:[#allocation6 + $0x64] sm:$0xf0] }
  0x18   :  { %v1821_v8 = vor.u32 %v2244_v6, %v1820_v5  ;;  %v1692_v9 = vld [vmem:[#allocation6 + $0xf0] sm:$0xf]  ;;  %v2212_v10 = vld [vmem:[#allocation6 + $0xf4] sm:$0xf0]  ;;  %737 = vmatpush.bf16.msra.mxu0 %v1629_v3  ;;  %v1748_v14 = vld [vmem:[#allocation6 + $0x160] sm:$0xf]  ;;  %v1621_v16 = vor.u32 %v2194_v13, %v1620_v11 }
  0x19   :  { %v1693_v12 = vor.u32 %v2212_v10, %v1692_v9  ;;  %v2226_v15 = vld [vmem:[#allocation6 + $0x164] sm:$0xf0]  ;;  %765 = vmatpush.bf16.msra.mxu2 %v1757_v7  ;;  %v1812_v18 = vld [vmem:[#allocation6 + $0x1e0] sm:$0xf]  ;;  %v1612_v23 = vld [vmem:[#allocation6 + $0x50] sm:$0xf] }
  0x1a   :  { %779 = vmatpush.bf16.msra.mxu3 %v1821_v8  ;;  %v1749_v17 = vor.u32 %v2226_v15, %v1748_v14  ;;  %v2242_v19 = vld [vmem:[#allocation6 + $0x1e4] sm:$0xf0]  ;;  %v1684_v20 = vld [vmem:[#allocation6 + $0xe0] sm:$0xf]  ;;  %v2192_v24 = vld [vmem:[#allocation6 + $0x54] sm:$0xf0] }
  0x1b   :  { %751 = vmatpush.bf16.msra.mxu1 %v1693_v12  ;;  %v1813_v21 = vor.u32 %v2242_v19, %v1812_v18  ;;  %v2210_v22 = vld [vmem:[#allocation6 + $0xe4] sm:$0xf0]  ;;  %v1740_v26 = vld [vmem:[#allocation6 + $0x150] sm:$0xf]  ;;  %v2224_v27 = vld [vmem:[#allocation6 + $0x154] sm:$0xf0]  ;;  %v1613_v29 = vor.u32 %v2192_v24, %v1612_v23 }
  0x1c   :  { %v1685_v25 = vor.u32 %v2210_v22, %v1684_v20  ;;  %v1804_v28 = vld [vmem:[#allocation6 + $0x1d0] sm:$0xf]  ;;  %738 = vmatpush.bf16.msra.mxu0 %v1621_v16  ;;  %v2240_v30 = vld [vmem:[#allocation6 + $0x1d4] sm:$0xf0]  ;;  %v1741_v33 = vor.u32 %v2224_v27, %v1740_v26  ;;  %v1604_v35 = vld [vmem:[#allocation6 + $0x40] sm:$0xf] }
  0x1d   :  { %v1676_v31 = vld [vmem:[#allocation6 + $0xd0] sm:$0xf]  ;;  %v2208_v32 = vld [vmem:[#allocation6 + $0xd4] sm:$0xf0]  ;;  %766 = vmatpush.bf16.msra.mxu2 %v1749_v17  ;;  %v1805_v34 = vor.u32 %v2240_v30, %v1804_v28  ;;  %v2190_v36 = vld [vmem:[#allocation6 + $0x44] sm:$0xf0] }
  0x1e   :  { %780 = vmatpush.bf16.msra.mxu3 %v1813_v21  ;;  %v1732_v37 = vld [vmem:[#allocation6 + $0x140] sm:$0xf]  ;;  %v1677_v38 = vor.u32 %v2208_v32, %v1676_v31  ;;  %v2222_v39 = vld [vmem:[#allocation6 + $0x144] sm:$0xf0]  ;;  %v1605_v44 = vor.u32 %v2190_v36, %v1604_v35  ;;  %v1596_v47 = vld [vmem:[#allocation6 + $0x30] sm:$0xf] }
  0x1f   :  { %752 = vmatpush.bf16.msra.mxu1 %v1685_v25  ;;  %v1796_v40 = vld [vmem:[#allocation6 + $0x1c0] sm:$0xf]  ;;  %v2238_v41 = vld [vmem:[#allocation6 + $0x1c4] sm:$0xf0]  ;;  %v1733_v45 = vor.u32 %v2222_v39, %v1732_v37  ;;  %v2188_v48 = vld [vmem:[#allocation6 + $0x34] sm:$0xf0] }
  0x20   :  { %v1668_v42 = vld [vmem:[#allocation6 + $0xc0] sm:$0xf]  ;;  %v2206_v43 = vld [vmem:[#allocation6 + $0xc4] sm:$0xf0]  ;;  %739 = vmatpush.bf16.msra.mxu0 %v1613_v29  ;;  %v1797_v46 = vor.u32 %v2238_v41, %v1796_v40  ;;  %v1724_v49 = vld [vmem:[#allocation6 + $0x130] sm:$0xf]  ;;  %v1597_v56 = vor.u32 %v2188_v48, %v1596_v47 }
  0x21   :  { %767 = vmatpush.bf16.msra.mxu2 %v1741_v33  ;;  %v1669_v50 = vor.u32 %v2206_v43, %v1668_v42  ;;  %v2220_v51 = vld [vmem:[#allocation6 + $0x134] sm:$0xf0]  ;;  %v1788_v52 = vld [vmem:[#allocation6 + $0x1b0] sm:$0xf]  ;;  %v1588_v59 = vld [vmem:[#allocation6 + $0x20] sm:$0xf] }
  0x22   :  { %781 = vmatpush.bf16.msra.mxu3 %v1805_v34  ;;  %v2236_v53 = vld [vmem:[#allocation6 + $0x1b4] sm:$0xf0]  ;;  %v1660_v54 = vld [vmem:[#allocation6 + $0xb0] sm:$0xf]  ;;  %v1725_v57 = vor.u32 %v2220_v51, %v1724_v49  ;;  %v2186_v60 = vld [vmem:[#allocation6 + $0x24] sm:$0xf0] }
  0x23   :  { %753 = vmatpush.bf16.msra.mxu1 %v1677_v38  ;;  %v2204_v55 = vld [vmem:[#allocation6 + $0xb4] sm:$0xf0]  ;;  %v1789_v58 = vor.u32 %v2236_v53, %v1788_v52  ;;  %v1716_v61 = vld [vmem:[#allocation6 + $0x120] sm:$0xf]  ;;  %v2218_v63 = vld [vmem:[#allocation6 + $0x124] sm:$0xf0]  ;;  %v1589_v4 = vor.u32 %v2186_v60, %v1588_v59 }
  0x24   :  { %740 = vmatpush.bf16.msra.mxu0 %v1605_v44  ;;  %v1661_v62 = vor.u32 %v2204_v55, %v1660_v54  ;;  %v1780_v0 = vld [vmem:[#allocation6 + $0x1a0] sm:$0xf]  ;;  %v2234_v1 = vld [vmem:[#allocation6 + $0x1a4] sm:$0xf0]  ;;  %v1580_v5 = vld [vmem:[#allocation6 + $0x10] sm:$0xf]  ;;  %v1717_v6 = vor.u32 %v2218_v63, %v1716_v61 }
  0x25   :  { %768 = vmatpush.bf16.msra.mxu2 %v1733_v45  ;;  %v1652_v2 = vld [vmem:[#allocation6 + $0xa0] sm:$0xf]  ;;  %v2202_v3 = vld [vmem:[#allocation6 + $0xa4] sm:$0xf0]  ;;  %v1781_v7 = vor.u32 %v2234_v1, %v1780_v0  ;;  %v2184_v8 = vld [vmem:[#allocation6 + $0x14] sm:$0xf0] }
  0x26   :  { %782 = vmatpush.bf16.msra.mxu3 %v1797_v46  ;;  %v1708_v9 = vld [vmem:[#allocation6 + $0x110] sm:$0xf]  ;;  %v2216_v10 = vld [vmem:[#allocation6 + $0x114] sm:$0xf0]  ;;  %v1653_v11 = vor.u32 %v2202_v3, %v1652_v2  ;;  %v1572_v16 = vld [vmem:[#allocation6] sm:$0xf]  ;;  %v1581_v18 = vor.u32 %v2184_v8, %v1580_v5 }
  0x27   :  { %754 = vmatpush.bf16.msra.mxu1 %v1669_v50  ;;  %v1772_v12 = vld [vmem:[#allocation6 + $0x190] sm:$0xf]  ;;  %v2232_v13 = vld [vmem:[#allocation6 + $0x194] sm:$0xf0]  ;;  %v2182_v17 = vld [vmem:[#allocation6 + $0x4] sm:$0xf0]  ;;  %v1709_v23 = vor.u32 %v2216_v10, %v1708_v9 }
  0x28   :  { %741 = vmatpush.bf16.msra.mxu0 %v1597_v56  ;;  %v1644_v14 = vld [vmem:[#allocation6 + $0x90] sm:$0xf]  ;;  %v2200_v15 = vld [vmem:[#allocation6 + $0x94] sm:$0xf0]  ;;  %v1700_v19 = vld [vmem:[#allocation6 + $0x100] sm:$0xf]  ;;  %v1773_v24 = vor.u32 %v2232_v13, %v1772_v12  ;;  %v1573_v35 = vor.u32 %v2182_v17, %v1572_v16 }
  0x29   :  { %769 = vmatpush.bf16.msra.mxu2 %v1725_v57  ;;  %v2214_v20 = vld [vmem:[#allocation6 + $0x104] sm:$0xf0]  ;;  %v1764_v21 = vld [vmem:[#allocation6 + $0x180] sm:$0xf]  ;;  %v1884_v25 = vld [vmem:[#allocation6 + $0x270] sm:$0xf]  ;;  %v1645_v28 = vor.u32 %v2200_v15, %v1644_v14 }
  0x2a   :  { %783 = vmatpush.bf16.msra.mxu3 %v1789_v58  ;;  %v2230_v22 = vld [vmem:[#allocation6 + $0x184] sm:$0xf0]  ;;  %v2260_v26 = vld [vmem:[#allocation6 + $0x274] sm:$0xf0]  ;;  %v2195_v27 = vld [vmem:[#allocation6 + $0x74] sm:$0xf]  ;;  %v1701_v39 = vor.u32 %v2214_v20, %v1700_v19 }
  0x2b   :  { %755 = vmatpush.bf16.msra.mxu1 %v1661_v62  ;;  %v1630_v29 = vld [vmem:[#allocation6 + $0x78] sm:$0xf0]  ;;  %v1636_v30 = vld [vmem:[#allocation6 + $0x80] sm:$0xf]  ;;  %v2198_v31 = vld [vmem:[#allocation6 + $0x84] sm:$0xf0]  ;;  %v1765_v40 = vor.u32 %v2230_v22, %v1764_v21  ;;  %v1885_v44 = vor.u32 %v2260_v26, %v1884_v25 }
  0x2c   :  { %742 = vmatpush.bf16.msra.mxu0 %v1589_v4  ;;  %v1552_v32 = vld [vmem:[#allocation3 + $0x8] sm:$0xf]  ;;  %v2178_v33 = vld [vmem:[#allocation3 + $0x20] sm:$0xf0]  ;;  %v2276_v36 = vld [vmem:[#allocation6 + $0x2f4] sm:$0xf0]  ;;  %v1633_v45 = vor.u32 %v2195_v27, %v1630_v29  ;;  %v1637_v49 = vor.u32 %v2198_v31, %v1636_v30 }
  0x2d   :  { %770 = vmatpush.bf16.msra.mxu2 %v1717_v6  ;;  %v1948_v34 = vld [vmem:[#allocation6 + $0x2f0] sm:$0xf]  ;;  %v1956_v37 = vld [vmem:[#allocation6 + $0x300] sm:$0xf]  ;;  %v2278_v38 = vld [vmem:[#allocation6 + $0x304] sm:$0xf0]  ;;  %v2541_v54 = vor.u32 %v2178_v33, %v1552_v32 }
  0x2e   :  { %784 = vmatpush.bf16.msra.mxu3 %v1781_v7  ;;  %v2211_v41 = vld [vmem:[#allocation6 + $0xf4] sm:$0xf]  ;;  %v1694_v42 = vld [vmem:[#allocation6 + $0xf8] sm:$0xf0]  ;;  %v1544_v43 = vld [vmem:[#allocation3] sm:$0xf]  ;;  %v1957_v50 = vor.u32 %v2278_v38, %v1956_v37  ;;  %v1949_v55 = vor.u32 %v2276_v36, %v1948_v34 }
  0x2f   :  { %756 = vmatpush.bf16.msra.mxu1 %v1653_v11  ;;  %v2177_v46 = vld [vmem:[#allocation3 + $0x18] sm:$0xf0]  ;;  %v2175_v47 = vld [vmem:[#allocation3 + $0xc] sm:$0xf]  ;;  %v1554_v48 = vld [vmem:[#allocation3 + $0x24] sm:$0xf0]  ;;  %v1697_v59 = vor.u32 %v2211_v41, %v1694_v42 }
  0x30   :  { %743 = vmatpush.bf16.msra.mxu0 %v1581_v18  ;;  %v1876_v51 = vld [vmem:[#allocation6 + $0x260] sm:$0xf]  ;;  %v2258_v52 = vld [vmem:[#allocation6 + $0x264] sm:$0xf0]  ;;  %v2193_v53 = vld [vmem:[#allocation6 + $0x64] sm:$0xf]  ;;  %v2543_v60 = vor.u32 %v2177_v46, %v1544_v43  ;;  %v2545_v63 = vor.u32 %v2175_v47, %v1554_v48 }
  0x31   :  { %771 = vmatpush.bf16.msra.mxu2 %v1709_v23  ;;  %v1622_v56 = vld [vmem:[#allocation6 + $0x68] sm:$0xf0]  ;;  %v1546_v58 = vld [vmem:[#allocation3 + $0x1c] sm:$0xf0]  ;;  %v1940_v61 = vld [vmem:[#allocation6 + $0x2e0] sm:$0xf]  ;;  %v1877_v0 = vor.u32 %v2258_v52, %v1876_v51 }
  0x32   :  { %785 = vmatpush.bf16.msra.mxu3 %v1773_v24  ;;  %v2174_v57 = vld [vmem:[#allocation3 + $0x4] sm:$0xf]  ;;  %v2274_v62 = vld [vmem:[#allocation6 + $0x2e4] sm:$0xf0]  ;;  %v2209_v1 = vld [vmem:[#allocation6 + $0xe4] sm:$0xf]  ;;  %v1625_v3 = vor.u32 %v2193_v53, %v1622_v56 }
  0x33   :  { %757 = vmatpush.bf16.msra.mxu1 %v1645_v28  ;;  %v1686_v2 = vld [vmem:[#allocation6 + $0xe8] sm:$0xf0]  ;;  %v2547_v4 = vor.u32 %v2174_v57, %v1546_v58  ;;  %v1868_v5 = vld [vmem:[#allocation6 + $0x250] sm:$0xf]  ;;  %v2256_v6 = vld [vmem:[#allocation6 + $0x254] sm:$0xf0]  ;;  %v1941_v7 = vor.u32 %v2274_v62, %v1940_v61 }
  0x34   :  { %744 = vmatpush.bf16.msra.mxu0 %v1573_v35  ;;  %v2191_v8 = vld [vmem:[#allocation6 + $0x54] sm:$0xf]  ;;  %v1614_v9 = vld [vmem:[#allocation6 + $0x58] sm:$0xf0]  ;;  %v1689_v10 = vor.u32 %v2209_v1, %v1686_v2  ;;  %v1932_v11 = vld [vmem:[#allocation6 + $0x2d0] sm:$0xf]  ;;  %v1869_v13 = vor.u32 %v2256_v6, %v1868_v5 }
  0x35   :  { %772 = vmatpush.bf16.msra.mxu2 %v1701_v39  ;;  %v2272_v12 = vld [vmem:[#allocation6 + $0x2d4] sm:$0xf0]  ;;  %v2207_v14 = vld [vmem:[#allocation6 + $0xd4] sm:$0xf]  ;;  %v1678_v15 = vld [vmem:[#allocation6 + $0xd8] sm:$0xf0]  ;;  %v1617_v16 = vor.u32 %v2191_v8, %v1614_v9 }
  0x36   :  { %786 = vmatpush.bf16.msra.mxu3 %v1765_v40  ;;  %v1860_v17 = vld [vmem:[#allocation6 + $0x240] sm:$0xf]  ;;  %v2254_v18 = vld [vmem:[#allocation6 + $0x244] sm:$0xf0]  ;;  %v1933_v19 = vor.u32 %v2272_v12, %v1932_v11  ;;  %v2189_v20 = vld [vmem:[#allocation6 + $0x44] sm:$0xf]  ;;  %v1681_v22 = vor.u32 %v2207_v14, %v1678_v15 }
  0x37   :  { %758 = vmatpush.bf16.msra.mxu1 %v1637_v49  ;;  %745 = vmatmul.bf16.vlgmr.msra.gmra.mxu0 %v2543_v60  ;;  %v1606_v21 = vld [vmem:[#allocation6 + $0x48] sm:$0xf0]  ;;  %v1924_v23 = vld [vmem:[#allocation6 + $0x2c0] sm:$0xf]  ;;  %v2270_v24 = vld [vmem:[#allocation6 + $0x2c4] sm:$0xf0]  ;;  %v1861_v25 = vor.u32 %v2254_v18, %v1860_v17 }
  0x38   :  { %793 = vmatpush.bf16.msrb.mxu0 %v1885_v44  ;;  %773 = vmatmul.bf16.vlgmr.msra.gmra.mxu2 %v2541_v54  ;;  %v2205_v26 = vld [vmem:[#allocation6 + $0xc4] sm:$0xf]  ;;  %v1670_v27 = vld [vmem:[#allocation6 + $0xc8] sm:$0xf0]  ;;  %v1609_v28 = vor.u32 %v2189_v20, %v1606_v21  ;;  %v1852_v29 = vld [vmem:[#allocation6 + $0x230] sm:$0xf]  ;;  %v1925_v31 = vor.u32 %v2270_v24, %v1924_v23 }
  0x39   :  { %828 = vmatpush.bf16.msrb.mxu2 %v1957_v50  ;;  %787 = vmatmul.bf16.vlgmr.msra.gmra.mxu3 %v2545_v63  ;;  %v2252_v30 = vld [vmem:[#allocation6 + $0x234] sm:$0xf0]  ;;  %v2187_v32 = vld [vmem:[#allocation6 + $0x34] sm:$0xf]  ;;  %v1598_v33 = vld [vmem:[#allocation6 + $0x38] sm:$0xf0]  ;;  %v1673_v35 = vor.u32 %v2205_v26, %v1670_v27 }
  0x3a   :  { %835 = vmatpush.bf16.msrb.mxu3 %v1633_v45  ;;  %759 = vmatmul.bf16.vlgmr.msra.gmra.mxu1 %v2547_v4  ;;  %v1916_v34 = vld [vmem:[#allocation6 + $0x2b0] sm:$0xf]  ;;  %v2268_v36 = vld [vmem:[#allocation6 + $0x2b4] sm:$0xf0]  ;;  %v1568_v37 = vld [vmem:[#allocation3 + $0x18] sm:$0xf]  ;;  %v1853_v39 = vor.u32 %v2252_v30, %v1852_v29  ;;  %v1601_v42 = vor.u32 %v2187_v32, %v1598_v33 }
  0x3b   :  { %807 = vmatpush.bf16.msrb.mxu1 %v1949_v55  ;;  %v2180_v38 = vld [vmem:[#allocation3 + $0x30] sm:$0xf0]  ;;  %v2203_v40 = vld [vmem:[#allocation6 + $0xb4] sm:$0xf]  ;;  %v1844_v43 = vld [vmem:[#allocation6 + $0x220] sm:$0xf]  ;;  %v1917_v45 = vor.u32 %v2268_v36, %v1916_v34 }
  0x3c   :  { %794 = vmatpush.bf16.msrb.mxu0 %v1877_v0  ;;  %v1662_v41 = vld [vmem:[#allocation6 + $0xb8] sm:$0xf0]  ;;  %v2250_v44 = vld [vmem:[#allocation6 + $0x224] sm:$0xf0]  ;;  %v2185_v46 = vld [vmem:[#allocation6 + $0x24] sm:$0xf]  ;;  %v2553_v48 = vor.u32 %v2180_v38, %v1568_v37 }
  0x3d   :  { %849 = vmatpush.bf16.msra.mxu2 %v1697_v59  ;;  %v1590_v47 = vld [vmem:[#allocation6 + $0x28] sm:$0xf0]  ;;  %v1665_v49 = vor.u32 %v2203_v40, %v1662_v41  ;;  %v1908_v50 = vld [vmem:[#allocation6 + $0x2a0] sm:$0xf]  ;;  %v2266_v51 = vld [vmem:[#allocation6 + $0x2a4] sm:$0xf0]  ;;  %v1845_v52 = vor.u32 %v2250_v44, %v1844_v43 }
  0x3e   :  { %836 = vmatpush.bf16.msrb.mxu3 %v1625_v3  ;;  %vm733_vm0 = vcmask 130048   ;;  %v2201_v53 = vld [vmem:[#allocation6 + $0xa4] sm:$0xf]  ;;  %v1654_v55 = vld [vmem:[#allocation6 + $0xa8] sm:$0xf0]  ;;  %v1593_v56 = vor.u32 %v2185_v46, %v1590_v47  ;;  %v1909_v61 = vor.u32 %v2266_v51, %v1908_v50  ;;  %s2477_s11 = smov [#allocation11]  }
  0x3f   :  { %808 = vmatpush.bf16.msrb.mxu1 %v1941_v7  ;;  %v1836_v57 = vld [vmem:[#allocation6 + $0x210] sm:$0xf]  ;;  %v2248_v58 = vld [vmem:[#allocation6 + $0x214] sm:$0xf0]  ;;  %v2183_v59 = vld [vmem:[#allocation6 + $0x14] sm:$0xf]  ;;  %v1657_v2 = vor.u32 %v2201_v53, %v1654_v55 }
  0x40   :  { %795 = vmatpush.bf16.msrb.mxu0 %v1869_v13  ;;  %v1582_v62 = vld [vmem:[#allocation6 + $0x18] sm:$0xf0]  ;;  %v1900_v0 = vld [vmem:[#allocation6 + $0x290] sm:$0xf]  ;;  %v2264_v1 = vld [vmem:[#allocation6 + $0x294] sm:$0xf0]  ;;  %v1837_v7 = vor.u32 %v2248_v58, %v1836_v57 }
  0x41   :  { %850 = vmatpush.bf16.msra.mxu2 %v1689_v10  ;;  %v2199_v3 = vld [vmem:[#allocation6 + $0x94] sm:$0xf]  ;;  %v1646_v5 = vld [vmem:[#allocation6 + $0x98] sm:$0xf0]  ;;  %v1828_v6 = vld [vmem:[#allocation6 + $0x200] sm:$0xf]  ;;  %v1585_v11 = vor.u32 %v2183_v59, %v1582_v62  ;;  %v1901_v15 = vor.u32 %v2264_v1, %v1900_v0 }
  0x42   :  { %837 = vmatpush.bf16.msrb.mxu3 %v1617_v16  ;;  %v2246_v8 = vld [vmem:[#allocation6 + $0x204] sm:$0xf0]  ;;  %v2181_v9 = vld [vmem:[#allocation6 + $0x4] sm:$0xf]  ;;  %v1574_v10 = vld [vmem:[#allocation6 + $0x8] sm:$0xf0] }
  0x43   :  { %809 = vmatpush.bf16.msrb.mxu1 %v1933_v19  ;;  %v2227_v12 = vld [vmem:[#allocation6 + $0x174] sm:$0xf]  ;;  %v1758_v13 = vld [vmem:[#allocation6 + $0x178] sm:$0xf0]  ;;  %v1892_v17 = vld [vmem:[#allocation6 + $0x280] sm:$0xf]  ;;  %v1649_v19 = vor.u32 %v2199_v3, %v1646_v5  ;;  %v1829_v23 = vor.u32 %v2246_v8, %v1828_v6  ;;  %v1577_v27 = vor.u32 %v2181_v9, %v1574_v10 }
  0x44   :  { %796 = vmatpush.bf16.msrb.mxu0 %v1861_v25  ;;  %v2259_v14 = vld [vmem:[#allocation6 + $0x274] sm:$0xf]  ;;  %v1886_v16 = vld [vmem:[#allocation6 + $0x278] sm:$0xf0]  ;;  %v2262_v18 = vld [vmem:[#allocation6 + $0x284] sm:$0xf0] }
  0x45   :  { %851 = vmatpush.bf16.msra.mxu2 %v1681_v22  ;;  %v1560_v20 = vld [vmem:[#allocation3 + $0x10] sm:$0xf]  ;;  %v2179_v21 = vld [vmem:[#allocation3 + $0x28] sm:$0xf0]  ;;  %v2197_v22 = vld [vmem:[#allocation6 + $0x84] sm:$0xf]  ;;  %v1889_v32 = vor.u32 %v2259_v14, %v1886_v16  ;;  %v1893_v33 = vor.u32 %v2262_v18, %v1892_v17 }
  0x46   :  { %838 = vmatpush.bf16.msrb.mxu3 %v1609_v28  ;;  %v1638_v24 = vld [vmem:[#allocation6 + $0x88] sm:$0xf0]  ;;  %v2243_v25 = vld [vmem:[#allocation6 + $0x1f4] sm:$0xf]  ;;  %v1822_v26 = vld [vmem:[#allocation6 + $0x1f8] sm:$0xf0]  ;;  %v1761_v28 = vor.u32 %v2227_v12, %v1758_v13  ;;  %v2557_v37 = vor.u32 %v2179_v21, %v1560_v20 }
  0x47   :  { %810 = vmatpush.bf16.msrb.mxu1 %v1925_v31  ;;  %v2275_v29 = vld [vmem:[#allocation6 + $0x2f4] sm:$0xf]  ;;  %v1950_v30 = vld [vmem:[#allocation6 + $0x2f8] sm:$0xf0]  ;;  %v1562_v34 = vld [vmem:[#allocation3 + $0x2c] sm:$0xf0]  ;;  %v1641_v38 = vor.u32 %v2197_v22, %v1638_v24  ;;  %v1825_v41 = vor.u32 %v2243_v25, %v1822_v26 }
  0x48   :  { %797 = vmatpush.bf16.msrb.mxu0 %v1853_v39  ;;  %1962 = vmatmul.msk.bf16.vlgmr.msrb.gmra.mxu2 %vm733_vm0, %v2553_v48  ;;  %v2176_v31 = vld [vmem:[#allocation3 + $0x14] sm:$0xf]  ;;  %v1750_v36 = vld [vmem:[#allocation6 + $0x168] sm:$0xf0]  ;;  %v2257_v39 = vld [vmem:[#allocation6 + $0x264] sm:$0xf] }
  0x49   :  { %852 = vmatpush.bf16.msra.mxu2 %v1673_v35  ;;  %v2225_v35 = vld [vmem:[#allocation6 + $0x164] sm:$0xf]  ;;  %v1878_v40 = vld [vmem:[#allocation6 + $0x268] sm:$0xf0]  ;;  %v2559_v44 = vor.u32 %v2176_v31, %v1562_v34  ;;  %v2223_v51 = vld [vmem:[#allocation6 + $0x154] sm:$0xf] }
  0x4a   :  { %839 = vmatpush.bf16.msrb.mxu3 %v1601_v42  ;;  %v1953_v42 = vor.u32 %v2275_v29, %v1950_v30  ;;  %v2241_v43 = vld [vmem:[#allocation6 + $0x1e4] sm:$0xf]  ;;  %v1814_v46 = vld [vmem:[#allocation6 + $0x1e8] sm:$0xf0]  ;;  %v1881_v50 = vor.u32 %v2257_v39, %v1878_v40  ;;  %v2255_v53 = vld [vmem:[#allocation6 + $0x254] sm:$0xf] }
  0x4b   :  { %811 = vmatpush.bf16.msrb.mxu1 %v1917_v45  ;;  %v1753_v45 = vor.u32 %v2225_v35, %v1750_v36  ;;  %v2273_v47 = vld [vmem:[#allocation6 + $0x2e4] sm:$0xf]  ;;  %v1870_v55 = vld [vmem:[#allocation6 + $0x258] sm:$0xf0]  ;;  %v2239_v58 = vld [vmem:[#allocation6 + $0x1d4] sm:$0xf] }
  0x4c   :  { %798 = vmatpush.bf16.msrb.mxu0 %v1845_v52  ;;  %v1742_v52 = vld [vmem:[#allocation6 + $0x158] sm:$0xf0]  ;;  %v2271_v62 = vld [vmem:[#allocation6 + $0x2d4] sm:$0xf]  ;;  %v1873_v1 = vor.u32 %v2255_v53, %v1870_v55  ;;  %v1734_v3 = vld [vmem:[#allocation6 + $0x148] sm:$0xf0] }
  0x4d   :  { %853 = vmatpush.bf16.msra.mxu2 %v1665_v49  ;;  %v1942_v49 = vld [vmem:[#allocation6 + $0x2e8] sm:$0xf0]  ;;  %v1745_v59 = vor.u32 %v2223_v51, %v1742_v52  ;;  %v1934_v0 = vld [vmem:[#allocation6 + $0x2d8] sm:$0xf0]  ;;  %v2253_v5 = vld [vmem:[#allocation6 + $0x244] sm:$0xf] }
  0x4e   :  { %840 = vmatpush.bf16.msrb.mxu3 %v1593_v56  ;;  %v1817_v56 = vor.u32 %v2241_v43, %v1814_v46  ;;  %v1945_v57 = vor.u32 %v2273_v47, %v1942_v49  ;;  %v1862_v6 = vld [vmem:[#allocation6 + $0x248] sm:$0xf0]  ;;  %v1937_v8 = vor.u32 %v2271_v62, %v1934_v0  ;;  %v2237_v9 = vld [vmem:[#allocation6 + $0x1c4] sm:$0xf]  ;;  %v1726_v16 = vld [vmem:[#allocation6 + $0x138] sm:$0xf0] }
  0x4f   :  { %812 = vmatpush.bf16.msrb.mxu1 %v1909_v61  ;;  %v1806_v61 = vld [vmem:[#allocation6 + $0x1d8] sm:$0xf0]  ;;  %v1798_v10 = vld [vmem:[#allocation6 + $0x1c8] sm:$0xf0]  ;;  %v2269_v12 = vld [vmem:[#allocation6 + $0x2c4] sm:$0xf]  ;;  %v1865_v14 = vor.u32 %v2253_v5, %v1862_v6 }
  0x50   :  { %799 = vmatpush.bf16.msrb.mxu0 %v1837_v7  ;;  %v1809_v7 = vor.u32 %v2239_v58, %v1806_v61  ;;  %v1926_v13 = vld [vmem:[#allocation6 + $0x2c8] sm:$0xf0]  ;;  %v2251_v17 = vld [vmem:[#allocation6 + $0x234] sm:$0xf]  ;;  %v1801_v18 = vor.u32 %v2237_v9, %v1798_v10  ;;  %v1790_v21 = vld [vmem:[#allocation6 + $0x1b8] sm:$0xf0]  ;;  %v937_v9 = vlaneseq }
  0x51   :  { %854 = vmatpush.bf16.msra.mxu2 %v1657_v2  ;;  %v2221_v2 = vld [vmem:[#allocation6 + $0x144] sm:$0xf]  ;;  %v2267_v22 = vld [vmem:[#allocation6 + $0x2b4] sm:$0xf]  ;;  %v1718_v26 = vld [vmem:[#allocation6 + $0x128] sm:$0xf0] }
  0x52   :  { %841 = vmatpush.bf16.msrb.mxu3 %v1585_v11  ;;  %v1737_v11 = vor.u32 %v2221_v2, %v1734_v3  ;;  %v2217_v25 = vld [vmem:[#allocation6 + $0x124] sm:$0xf]  ;;  %v1910_v35 = vld [vmem:[#allocation6 + $0x2a8] sm:$0xf0]  ;;  %v1710_v39 = vld [vmem:[#allocation6 + $0x118] sm:$0xf0] }
  0x53   :  { %813 = vmatpush.bf16.msrb.mxu1 %v1901_v15  ;;  %v2219_v15 = vld [vmem:[#allocation6 + $0x134] sm:$0xf]  ;;  %v2233_v31 = vld [vmem:[#allocation6 + $0x1a4] sm:$0xf]  ;;  %v1774_v47 = vld [vmem:[#allocation6 + $0x198] sm:$0xf0] }
  0x54   :  { %800 = vmatpush.bf16.msrb.mxu0 %v1829_v23  ;;  %v1729_v20 = vor.u32 %v2219_v15, %v1726_v16  ;;  %v1918_v23 = vld [vmem:[#allocation6 + $0x2b8] sm:$0xf0]  ;;  %v2265_v34 = vld [vmem:[#allocation6 + $0x2a4] sm:$0xf]  ;;  %v2247_v40 = vld [vmem:[#allocation6 + $0x214] sm:$0xf] }
  0x55   :  { %855 = vmatpush.bf16.msra.mxu2 %v1649_v19  ;;  %v2235_v19 = vld [vmem:[#allocation6 + $0x1b4] sm:$0xf]  ;;  %v1921_v30 = vor.u32 %v2267_v22, %v1918_v23  ;;  %v1913_v43 = vor.u32 %v2265_v34, %v1910_v35  ;;  %v2213_v52 = vld [vmem:[#allocation6 + $0x104] sm:$0xf]  ;;  %v1702_v53 = vld [vmem:[#allocation6 + $0x108] sm:$0xf0] }
  0x56   :  { %842 = vmatpush.bf16.msrb.mxu3 %v1577_v27  ;;  %v2249_v27 = vld [vmem:[#allocation6 + $0x224] sm:$0xf]  ;;  %v1793_v29 = vor.u32 %v2235_v19, %v1790_v21  ;;  %v2263_v49 = vld [vmem:[#allocation6 + $0x294] sm:$0xf]  ;;  %v1958_v58 = vld [vmem:[#allocation6 + $0x308] sm:$0xf0]  ;;  %v1705_v62 = vor.u32 %v2213_v52, %v1702_v53 }
  0x57   :  { %814 = vmatpush.bf16.msrb.mxu1 %v1893_v33  ;;  %801 = vmatmul.bf16.vlgmr.msrb.gmra.mxu0 %v2557_v37  ;;  %v1782_v33 = vld [vmem:[#allocation6 + $0x1a8] sm:$0xf0]  ;;  %v2245_v55 = vld [vmem:[#allocation6 + $0x204] sm:$0xf]  ;;  %v2571_v10 = vshrl.u32 %v937_v9, 7  ;;  %s1525_s12 = sshll.u32 %s2477_s11, 4  ;;  %s1526_s12 = int_to_ptr.vmem [resolvable:$true] %s1525_s12 }
  0x58   :  { %863 = vmatpush.bf16.msra.mxu0 %v1761_v28  ;;  %v1846_v28 = vld [vmem:[#allocation6 + $0x228] sm:$0xf0]  ;;  %v2229_v0 = vld [vmem:[#allocation6 + $0x184] sm:$0xf]  ;;  %s955_s29 = smul.u32 3266489917, %s2646_s0 }
  0x59   :  { %856 = vmatpush.bf16.msra.mxu2 %v1641_v38  ;;  %843 = vmatmul.bf16.vlgmr.msrb.gmra.mxu3 %v2543_v60  ;;  %v1929_v60 = vor.u32 %v2269_v12, %v1926_v13  ;;  %v1849_v36 = vor.u32 %v2249_v27, %v1846_v28  ;;  %v2215_v38 = vld [vmem:[#allocation6 + $0x114] sm:$0xf]  ;;  %v2261_v3 = vld [vmem:[#allocation6 + $0x284] sm:$0xf]  ;;  %v1894_v5 = vld [vmem:[#allocation6 + $0x288] sm:$0xf0] }
  0x5a   :  { %891 = vmatpush.bf16.msra.mxu3 %v1889_v32  ;;  %815 = vmatmul.bf16.vlgmr.msrb.gmra.mxu1 %v2559_v44  ;;  %v1721_v32 = vor.u32 %v2217_v25, %v1718_v26  ;;  %v1713_v46 = vor.u32 %v2215_v38, %v1710_v39  ;;  %v2576_v12 = vand.u32 127, %v937_v9  ;;  %v2293_v13 = vld [vmem:[#allocation8 + $0x74] sm:$0xf]  ;;  %v2016_v21 = vld [vmem:[#allocation8 + $0x68] sm:$0xf0]  ;;  %s1527_s2 = sshll.u32 %s2654_s8, 4  ;;  %s1528_s2 = int_to_ptr.hbm [resolvable:$true] %s1527_s2 }
  0x5b   :  { %877 = vmatpush.bf16.msra.mxu1 %v1825_v41  ;;  %v1838_v41 = vld [vmem:[#allocation6 + $0x218] sm:$0xf0]  ;;  %v2006_v25 = vld [vmem:[#allocation8 + $0x50] sm:$0xf]  ;;  %v2290_v27 = vld [vmem:[#allocation8 + $0x54] sm:$0xf0] }
  0x5c   :  { %864 = vmatpush.bf16.msra.mxu0 %v1753_v45  ;;  %857 = vmatmul.bf16.vlgmr.msra.gmra.mxu2 %v2547_v4  ;;  %v1854_v4 = vld [vmem:[#allocation6 + $0x238] sm:$0xf0]  ;;  %v2231_v45 = vld [vmem:[#allocation6 + $0x194] sm:$0xf]  ;;  %v1841_v51 = vor.u32 %v2247_v40, %v1838_v41  ;;  %v2007_v34 = vor.u32 %v2290_v27, %v2006_v25  ;;  %v1998_v39 = vld [vmem:[#allocation8 + $0x40] sm:$0xf] }
  0x5d   :  { %905 = vmatpush.bf16.msrb.mxu2 %v1953_v42  ;;  %v1857_v24 = vor.u32 %v2251_v17, %v1854_v4  ;;  %v1785_v42 = vor.u32 %v2233_v31, %v1782_v33  ;;  %v2024_v17 = vld [vmem:[#allocation8 + $0x78] sm:$0xf0]  ;;  %v2014_v4 = vld [vmem:[#allocation8 + $0x60] sm:$0xf]  ;;  %v2288_v40 = vld [vmem:[#allocation8 + $0x44] sm:$0xf0] }
  0x5e   :  { %892 = vmatpush.bf16.msra.mxu3 %v1881_v50  ;;  %v1902_v50 = vld [vmem:[#allocation6 + $0x298] sm:$0xf0]  ;;  %v2027_v19 = vor.u32 %v2293_v13, %v2024_v17  ;;  %v2008_v31 = vld [vmem:[#allocation8 + $0x58] sm:$0xf0]  ;;  %v2287_v41 = vld [vmem:[#allocation8 + $0x44] sm:$0xf] }
  0x5f   :  { %878 = vmatpush.bf16.msra.mxu1 %v1817_v56  ;;  %v1830_v56 = vld [vmem:[#allocation6 + $0x208] sm:$0xf0]  ;;  %v1905_v61 = vor.u32 %v2263_v49, %v1902_v50  ;;  %v1990_v49 = vld [vmem:[#allocation8 + $0x30] sm:$0xf]  ;;  %v2286_v50 = vld [vmem:[#allocation8 + $0x34] sm:$0xf0] }
  0x60   :  { %865 = vmatpush.bf16.msra.mxu0 %v1745_v59  ;;  %v1777_v59 = vor.u32 %v2231_v45, %v1774_v47  ;;  %v1833_v2 = vor.u32 %v2245_v55, %v1830_v56  ;;  %v1991_v52 = vor.u32 %v2286_v50, %v1990_v49  ;;  %v1992_v53 = vld [vmem:[#allocation8 + $0x38] sm:$0xf0] }
  0x61   :  { %906 = vmatpush.bf16.msrb.mxu2 %v1945_v57  ;;  %v2277_v57 = vld [vmem:[#allocation6 + $0x304] sm:$0xf] }
  0x62   :  { %893 = vmatpush.bf16.msra.mxu3 %v1873_v1  ;;  %v1766_v1 = vld [vmem:[#allocation6 + $0x188] sm:$0xf0]  ;;  %v1961_v6 = vor.u32 %v2277_v57, %v1958_v58  ;;  %v1982_v58 = vld [vmem:[#allocation8 + $0x20] sm:$0xf] }
  0x63   :  { %879 = vmatpush.bf16.msra.mxu1 %v1809_v7  ;;  %v1769_v7 = vor.u32 %v2229_v0, %v1766_v1  ;;  %v1984_v0 = vld [vmem:[#allocation8 + $0x28] sm:$0xf0] }
  0x64   :  { %866 = vmatpush.bf16.msra.mxu0 %v1737_v11  ;;  %v2574_v11 = vadd.s32 8, %v2571_v10 }
  0x65   :  { %907 = vmatpush.bf16.msrb.mxu2 %v1937_v8  ;;  %v1897_v8 = vor.u32 %v2261_v3, %v1894_v5  ;;  %v2601_v5 = vld [vmem:[%s2649_s3] sm:$0x3] }
  0x66   :  { %894 = vmatpush.bf16.msra.mxu3 %v1865_v14 }
  0x67   :  { %880 = vmatpush.bf16.msra.mxu1 %v1801_v18  ;;  %v2292_v18 = vld [vmem:[#allocation8 + $0x64] sm:$0xf0] }
  0x68   :  { %867 = vmatpush.bf16.msra.mxu0 %v1729_v20  ;;  %v2291_v20 = vld [vmem:[#allocation8 + $0x64] sm:$0xf] }
  0x69   :  { %908 = vmatpush.bf16.msrb.mxu2 %v1929_v60  ;;  %v2588_v60 = vstv %s955_s29  ;;  %v2019_v26 = vor.u32 %v2291_v20, %v2016_v21  ;;  %v1968_v21 = vld [vmem:[#allocation8 + $0x8] sm:$0xf0] }
  0x6a   :  { %895 = vmatpush.bf16.msra.mxu3 %v1857_v24  ;;  %v2015_v24 = vor.u32 %v2292_v18, %v2014_v4  ;;  %v1966_v4 = vld [vmem:[#allocation8] sm:$0xf]  ;;  %v2280_v18 = vld [vmem:[#allocation8 + $0x4] sm:$0xf0] }
  0x6b   :  { %881 = vmatpush.bf16.msra.mxu1 %v1793_v29  ;;  %v1967_v20 = vor.u32 %v2280_v18, %v1966_v4 }
  0x6c   :  { %868 = vmatpush.bf16.msra.mxu0 %v1721_v32 }
  0x6d   :  { %909 = vmatpush.bf16.msrb.mxu2 %v1921_v30  ;;  %v2289_v30 = vld [vmem:[#allocation8 + $0x54] sm:$0xf] }
  0x6e   :  { %896 = vmatpush.bf16.msra.mxu3 %v1849_v36  ;;  %v2011_v35 = vor.u32 %v2289_v30, %v2008_v31 }
  0x6f   :  { %882 = vmatpush.bf16.msra.mxu1 %v1785_v42  ;;  %v1999_v42 = vor.u32 %v2288_v40, %v1998_v39 }
  0x70   :  { %869 = vmatpush.bf16.msra.mxu0 %v1713_v46 }
  0x71   :  { %910 = vmatpush.bf16.msrb.mxu2 %v1913_v43  ;;  %v2000_v43 = vld [vmem:[#allocation8 + $0x48] sm:$0xf0] }
  0x72   :  { %897 = vmatpush.bf16.msra.mxu3 %v1841_v51  ;;  %v2003_v45 = vor.u32 %v2287_v41, %v2000_v43  ;;  %v2285_v51 = vld [vmem:[#allocation8 + $0x34] sm:$0xf]  ;;  %v2310_v43 = vld [vmem:[#allocation8 + $0xf4] sm:$0xf0] }
  0x73   :  { %883 = vmatpush.bf16.msra.mxu1 %v1777_v59  ;;  %v1995_v55 = vor.u32 %v2285_v51, %v1992_v53  ;;  %v2284_v59 = vld [vmem:[#allocation8 + $0x24] sm:$0xf0] }
  0x74   :  { %870 = vmatpush.bf16.msra.mxu0 %v1705_v62  ;;  %v1983_v62 = vor.u32 %v2284_v59, %v1982_v58 }
  0x75   :  { %911 = vmatpush.bf16.msrb.mxu2 %v1905_v61  ;;  %v2283_v61 = vld [vmem:[#allocation8 + $0x24] sm:$0xf] }
  0x76   :  { %898 = vmatpush.bf16.msra.mxu3 %v1833_v2  ;;  %v1987_v1 = vor.u32 %v2283_v61, %v1984_v0  ;;  %v2080_v0 = vld [vmem:[#allocation8 + $0xe8] sm:$0xf0] }
  0x77   :  { %884 = vmatpush.bf16.msra.mxu1 %v1769_v7  ;;  %871 = vmatmul.bf16.vlgmr.msra.gmra.mxu0 %v2541_v54  ;;  %v946_v54 = vmul.u32 2654435761, %v2571_v10  ;;  %v2282_v7 = vld [vmem:[#allocation8 + $0x14] sm:$0xf0] }
  0x78   :  { %926 = vmatpush.bf16.msrb.mxu0 %v1961_v6  ;;  %v1974_v6 = vld [vmem:[#allocation8 + $0x10] sm:$0xf] }
  0x79   :  { %899 = vmatmul.bf16.vlgmr.msra.gmra.mxu3 %v2557_v37  ;;  %912 = vmatpush.bf16.msrb.mxu2 %v1897_v8  ;;  %v948_v37 = vmul.u32 2246822519, %v2576_v12  ;;  %v2281_v8 = vld [vmem:[#allocation8 + $0x14] sm:$0xf]  ;;  %v1975_v9 = vor.u32 %v2282_v7, %v1974_v6 }
  0x7a   :  { %885 = vmatmul.bf16.vlgmr.msra.gmra.mxu1 %v2545_v63  ;;  %v947_v63 = vmul.u32 2654435761, %v2574_v11  ;;  %v2078_v11 = vld [vmem:[#allocation8 + $0xe0] sm:$0xf] }
  0x7b   :  { %v950_v14 = vadd.s32 %v948_v37, %v946_v54 }
  0x7c   :  { %913 = vmatmul.bf16.vlgmr.msrb.gmra.mxu2 %v2559_v44  ;;  %v2022_v44 = vld [vmem:[#allocation8 + $0x70] sm:$0xf]  ;;  %v952_v15 = vadd.s32 %v948_v37, %v947_v63  ;;  %1257 = vmatpush.bf16.msra.mxu0 %v2027_v19  ;;  %v1976_v37 = vld [vmem:[#allocation8 + $0x18] sm:$0xf0]  ;;  %v2279_v19 = vld [vmem:[#allocation8 + $0x4] sm:$0xf] }
  0x7d   :  { %v2591_v22 = vadd.s32 %v2588_v60, %v950_v14  ;;  %v1979_v14 = vor.u32 %v2281_v8, %v1976_v37  ;;  %v1971_v25 = vor.u32 %v2279_v19, %v1968_v21 }
  0x7e   :  { %v2594_v23 = vadd.s32 %v2588_v60, %v952_v15 }
  0x7f   :  { %v961_v28 = vadd.s32 19088743, %v2591_v22 }
  0x80   :  { %v963_v29 = vadd.s32 19088743, %v2594_v23  ;;  %1258 = vmatpush.bf16.msra.mxu0 %v2019_v26 }
  0x81   :  { %v965_v32 = vand.u32 2147483647, %v961_v28 }
  0x82   :  { %v967_v33 = vand.u32 2147483647, %v963_v29 }
  0x83   :  { %v969_v36 = vshra.s32 %v965_v32, 16 }
  0x84   :  { %v971_v38 = vshra.s32 %v967_v33, 16  ;;  %1259 = vmatpush.bf16.msra.mxu0 %v2011_v35  ;;  %v945_v33 = vadd.s32 128, %v2576_v12 }
  0x85   :  { %v973_v46 = vxor.u32 %v969_v36, %v961_v28 }
  0x86   :  { %v975_v47 = vxor.u32 %v971_v38, %v963_v29  ;;  %v949_v41 = vmul.u32 2246822519, %v945_v33  ;;  %v2064_v33 = vld [vmem:[#allocation8 + $0xc8] sm:$0xf0] }
  0x87   :  { %1963 = vmatmul.msk.bf16.vlgmr.msrb.gmra.mxu0 %vm733_vm0, %v2553_v48  ;;  %v2294_v48 = vld [vmem:[#allocation8 + $0x74] sm:$0xf0]  ;;  %v977_v56 = vmul.u32 2246822507, %v973_v46 }
  0x88   :  { %v2023_v16 = vor.u32 %v2294_v48, %v2022_v44  ;;  %1260 = vmatpush.bf16.msra.mxu0 %v2003_v45  ;;  %v979_v57 = vmul.u32 2246822507, %v975_v47  ;;  %v204_v44 = vperm.slane %v2601_v5, 0  ;;  %v2309_v45 = vld [vmem:[#allocation8 + $0xf4] sm:$0xf]  ;;  %v951_v46 = vadd.s32 %v949_v41, %v946_v54 }
  0x89   :  { %v981_v2 = vand.u32 2147483647, %v977_v56  ;;  %v953_v47 = vadd.s32 %v949_v41, %v947_v63  ;;  %v2308_v54 = vld [vmem:[#allocation8 + $0xe4] sm:$0xf0]  ;;  %v2307_v63 = vld [vmem:[#allocation8 + $0xe4] sm:$0xf] }
  0x8a   :  { %1229 = vmatpush.bf16.msrb.mxu1 %v2023_v16  ;;  %v983_v3 = vand.u32 2147483647, %v979_v57 }
  0x8b   :  { %v985_v15 = vshra.s32 %v981_v2, 13 }
  0x8c   :  { %1261 = vmatpush.bf16.msra.mxu0 %v1995_v55  ;;  %v987_v16 = vshra.s32 %v983_v3, 13 }
  0x8d   :  { %v989_v26 = vxor.u32 %v985_v15, %v977_v56  ;;  %v2610_v56 = vadd.s32 %v2588_v60, %v951_v46  ;;  %v2301_v46 = vld [vmem:[#allocation8 + $0xb4] sm:$0xf] }
  0x8e   :  { %1230 = vmatpush.bf16.msrb.mxu1 %v2015_v24  ;;  %v991_v27 = vxor.u32 %v987_v16, %v979_v57  ;;  %v2613_v57 = vadd.s32 %v2588_v60, %v953_v47  ;;  %v2083_v60 = vor.u32 %v2307_v63, %v2080_v0  ;;  %v2072_v16 = vld [vmem:[#allocation8 + $0xd8] sm:$0xf0] }
  0x8f   :  { %v993_v29 = vmul.u32 3266489909, %v989_v26 }
  0x90   :  { %1262 = vmatpush.bf16.msra.mxu0 %v1987_v1  ;;  %v995_v30 = vmul.u32 3266489909, %v991_v27  ;;  %v962_v1 = vadd.s32 19088743, %v2610_v56  ;;  %v964_v2 = vadd.s32 19088743, %v2613_v57 }
  0x91   :  { %v997_v38 = vand.u32 2147483647, %v993_v29  ;;  %v2062_v27 = vld [vmem:[#allocation8 + $0xc0] sm:$0xf] }
  0x92   :  { %1231 = vmatpush.bf16.msrb.mxu1 %v2007_v34  ;;  %v999_v39 = vand.u32 2147483647, %v995_v30  ;;  %v966_v37 = vand.u32 2147483647, %v962_v1 }
  0x93   :  { %v1001_v50 = vshra.s32 %v997_v38, 16 }
  0x94   :  { %1263 = vmatpush.bf16.msra.mxu0 %v1979_v14  ;;  %v1003_v51 = vshra.s32 %v999_v39, 16  ;;  %v2305_v14 = vld [vmem:[#allocation8 + $0xd4] sm:$0xf] }
  0x95   :  { %v1005_v6 = vxor.u32 %v1001_v50, %v993_v29  ;;  %v2075_v19 = vor.u32 %v2305_v14, %v2072_v16  ;;  %v2030_v14 = vld [vmem:[#allocation8 + $0x80] sm:$0xf]  ;;  %v2295_v16 = vld [vmem:[#allocation8 + $0x84] sm:$0xf] }
  0x96   :  { %1232 = vmatpush.bf16.msrb.mxu1 %v1999_v42  ;;  %v2086_v42 = vld [vmem:[#allocation8 + $0xf0] sm:$0xf]  ;;  %v1007_v7 = vxor.u32 %v1003_v51, %v995_v30 }
  0x97   :  { %v2087_v12 = vor.u32 %v2310_v43, %v2086_v42  ;;  %v1009_v4 = vand.u32 2147483647, %v1005_v6  ;;  %v2054_v43 = vld [vmem:[#allocation8 + $0xb0] sm:$0xf] }
  0x98   :  { %1264 = vmatpush.bf16.msra.mxu0 %v1971_v25  ;;  %v1011_v18 = vand.u32 2147483647, %v1007_v7  ;;  %v2038_v7 = vld [vmem:[#allocation8 + $0x90] sm:$0xf] }
  0x99   :  { %1243 = vmatpush.bf16.msrb.mxu3 %v2087_v12 }
  0x9a   :  { %1233 = vmatpush.bf16.msrb.mxu1 %v1991_v52  ;;  %v2088_v52 = vld [vmem:[#allocation8 + $0xf8] sm:$0xf0] }
  0x9b   :  { %v2091_v55 = vor.u32 %v2309_v45, %v2088_v52  ;;  %v2302_v45 = vld [vmem:[#allocation8 + $0xb4] sm:$0xf0] }
  0x9c   :  { %v2055_v47 = vor.u32 %v2302_v45, %v2054_v43 }
  0x9d   :  { %1271 = vmatpush.bf16.msra.mxu2 %v2091_v55 }
  0x9e   :  { %1234 = vmatpush.bf16.msrb.mxu1 %v1983_v62  ;;  %v2079_v62 = vor.u32 %v2308_v54, %v2078_v11  ;;  %v2300_v11 = vld [vmem:[#allocation8 + $0xa4] sm:$0xf0] }
  0xa0   :  { %1244 = vmatpush.bf16.msrb.mxu3 %v2079_v62  ;;  %v2048_v62 = vld [vmem:[#allocation8 + $0xa8] sm:$0xf0] }
  0xa1   :  { %1272 = vmatpush.bf16.msra.mxu2 %v2083_v60  ;;  %v2298_v60 = vld [vmem:[#allocation8 + $0x94] sm:$0xf0] }
  0xa2   :  { %1235 = vmatpush.bf16.msrb.mxu1 %v1975_v9 }
  0xa5   :  { %1273 = vmatpush.bf16.msra.mxu2 %v2075_v19 }
  0xa6   :  { %1236 = vmatpush.bf16.msrb.mxu1 %v1967_v20 }
  0xb4   :  { %v746_v48 = vpop.f32.mrf.mxu0 }
  0xb5   :  { %v747_v24 = vadd.f32 %v746_v48, %v204_v44  ;;  %v2070_v48 = vld [vmem:[#allocation8 + $0xd0] sm:$0xf] }
  0xb7   :  { %v760_v17 = vpop.f32.mrf.mxu1 }
  0xb8   :  { %v761_v28 = vadd.f32 %v760_v17, %v747_v24  ;;  %v970_v24 = vshra.s32 %v966_v37, 16  ;;  %v2040_v37 = vld [vmem:[#allocation8 + $0x98] sm:$0xf0] }
  0xbb   :  { %v774_v13 = vpop.f32.mrf.mxu2 }
  0xbc   :  { %v748_v31 = vpop.f32.mrf.mxu0  ;;  %v775_v34 = vadd.f32 %v774_v13, %v761_v28  ;;  %v788_v35 = vpop.f32.mrf.mxu3  ;;  %v2306_v13 = vld [vmem:[#allocation8 + $0xd4] sm:$0xf0]  ;;  %v2304_v28 = vld [vmem:[#allocation8 + $0xc4] sm:$0xf0] }
  0xbd   :  { %v749_v40 = vadd.f32 %v748_v31, %v204_v44  ;;  %v968_v44 = vand.u32 2147483647, %v964_v2  ;;  %v2071_v15 = vor.u32 %v2306_v13, %v2070_v48  ;;  %v2063_v31 = vor.u32 %v2304_v28, %v2062_v27 }
  0xbe   :  { %v789_v49 = vadd.f32 %v788_v35, %v775_v34  ;;  %v1013_v35 = vshra.s32 %v1009_v4, 7 }
  0xbf   :  { %v762_v36 = vpop.f32.mrf.mxu1  ;;  %1245 = vmatpush.bf16.msrb.mxu3 %v2071_v15  ;;  %v972_v25 = vshra.s32 %v968_v44, 16  ;;  %v2296_v15 = vld [vmem:[#allocation8 + $0x84] sm:$0xf0] }
  0xc0   :  { %v763_v53 = vadd.f32 %v762_v36, %v749_v40  ;;  %v1015_v36 = vshra.s32 %v1011_v18, 7  ;;  %v974_v40 = vxor.u32 %v970_v24, %v962_v1  ;;  %vm2617_vm1 = vcmp.ge.s32.totalorder %v1013_v35, 3355443  ;;  %v2032_v18 = vld [vmem:[#allocation8 + $0x88] sm:$0xf0] }
  0xc1   :  { %v976_v41 = vxor.u32 %v972_v25, %v964_v2  ;;  %v2031_v4 = vor.u32 %v2296_v15, %v2030_v14  ;;  %v2035_v19 = vor.u32 %v2295_v16, %v2032_v18  ;;  %v1289_v14 = vadd.s32 124076833, %v2591_v22  ;;  %v2322_v22 = vld [vmem:[#allocation9 + $0x58] sm:$0xff] }
  0xc2   :  { %vm2621_vm2 = vcmp.ge.s32.totalorder %v1015_v36, 3355443  ;;  %v1291_v15 = vadd.s32 124076833, %v2594_v23  ;;  %v1290_v16 = vadd.s32 124076833, %v2610_v56 }
  0xc3   :  { %v776_v32 = vpop.f32.mrf.mxu2  ;;  %1246 = vmatpush.bf16.msrb.mxu3 %v2063_v31  ;;  %v980_v55 = vmul.u32 2246822507, %v976_v41  ;;  %vm2092_vm3 = vmpackc.low %vm2621_vm2, %vm2617_vm1 }
  0xc4   :  { %v777_v3 = vadd.f32 %v776_v32, %v763_v53  ;;  %v790_v8 = vpop.f32.mrf.mxu3  ;;  %v2303_v32 = vld [vmem:[#allocation8 + $0xc4] sm:$0xf]  ;;  %v978_v53 = vmul.u32 2246822507, %v974_v40  ;;  %v1295_v18 = vand.u32 2147483647, %v1291_v15 }
  0xc5   :  { %v2067_v38 = vor.u32 %v2303_v32, %v2064_v33 }
  0xc6   :  { %v791_v17 = vadd.f32 %v790_v8, %v777_v3  ;;  %v982_v2 = vand.u32 2147483647, %v978_v53  ;;  %v984_v3 = vand.u32 2147483647, %v980_v55  ;;  %v2297_v8 = vld [vmem:[#allocation8 + $0x94] sm:$0xf] }
  0xc7   :  { %1274 = vmatpush.bf16.msra.mxu2 %v2067_v38  ;;  %1247 = vmatpush.bf16.msrb.mxu3 %v2055_v47  ;;  %v2043_v44 = vor.u32 %v2297_v8, %v2040_v37  ;;  %v2317_v8 = vld [vmem:[#allocation9 + $0x30] sm:$0xff]  ;;  %v2316_v37 = vld [vmem:[#allocation9 + $0x28] sm:$0xff] }
  0xc8   :  { %v986_v48 = vshra.s32 %v982_v2, 13  ;;  %v988_v13 = vshra.s32 %v984_v3, 13 }
  0xca   :  { %v992_v24 = vxor.u32 %v988_v13, %v980_v55  ;;  %v2323_v13 = vld [vmem:[#allocation9 + $0x60] sm:$0xff] }
  0xcb   :  { %v830_v59 = vpop.f32.mrf.mxu2 }
  0xd3   :  { %v832_v30 = vpop.f32.mrf.mxu2 }
  0xd4   :  { %v802_v58 = vpop.f32.mrf.mxu0 }
  0xd5   :  { %v803_v10 = vadd.f32 %v802_v58, %v789_v49  ;;  %v2056_v49 = vld [vmem:[#allocation8 + $0xb8] sm:$0xf0] }
  0xd6   :  { %v2059_v52 = vor.u32 %v2301_v46, %v2056_v49 }
  0xd7   :  { %v816_v61 = vpop.f32.mrf.mxu1 }
  0xd8   :  { %v817_v9 = vadd.f32 %v816_v61, %v803_v10  ;;  %1275 = vmatpush.bf16.msra.mxu2 %v2059_v52  ;;  %v2046_v10 = vld [vmem:[#allocation8 + $0xa0] sm:$0xf]  ;;  %v2299_v61 = vld [vmem:[#allocation8 + $0xa4] sm:$0xf] }
  0xd9   :  { %v2047_v63 = vor.u32 %v2300_v11, %v2046_v10  ;;  %v2051_v1 = vor.u32 %v2299_v61, %v2048_v62 }
  0xda   :  { %v831_v20 = vadd.f32 %v830_v59, %v817_v9  ;;  %v2039_v9 = vor.u32 %v2298_v60, %v2038_v7  ;;  %v2318_v7 = vld [vmem:[#allocation9 + $0x38] sm:$0xff] }
  0xdb   :  { %1248 = vmatpush.bf16.msrb.mxu3 %v2047_v63  ;;  %v2326_v60 = vld [vmem:[#allocation9 + $0x78] sm:$0xff]  ;;  %1491 = vmatpush.bf16.msra.mxu1 %v2318_v7 }
  0xdc   :  { %v804_v21 = vpop.f32.mrf.mxu0  ;;  %v933_v39 = vmax.f32 %v831_v20, 0.0  ;;  %v844_v54 = vpop.f32.mrf.mxu3  ;;  %1276 = vmatpush.bf16.msra.mxu2 %v2051_v1 }
  0xdd   :  { %v805_v26 = vadd.f32 %v804_v21, %v791_v17  ;;  %v205_v17 = vperm.slane %v2601_v5, 1  ;;  %v990_v21 = vxor.u32 %v986_v48, %v978_v53  ;;  %v2315_v48 = vld [vmem:[#allocation9 + $0x20] sm:$0xff] }
  0xde   :  { %v1021_v58 = vmul.f32 1.25, %v933_v39 }
  0xdf   :  { %v818_v29 = vpop.f32.mrf.mxu1  ;;  %v858_v6 = vpop.f32.mrf.mxu2  ;;  %1249 = vmatpush.bf16.msrb.mxu3 %v2039_v9  ;;  %v994_v28 = vmul.u32 3266489909, %v990_v21  ;;  %v2325_v9 = vld [vmem:[#allocation9 + $0x70] sm:$0xff]  ;;  %1492 = vmatpush.bf16.msra.mxu1 %v2317_v8 }
  0xe0   :  { %v819_v34 = vadd.f32 %v818_v29, %v805_v26  ;;  %1277 = vmatpush.bf16.msra.mxu2 %v2043_v44  ;;  %v845_v26 = vadd.f32 %v844_v54, %v205_v17  ;;  %v996_v29 = vmul.u32 3266489909, %v992_v24  ;;  %v2324_v44 = vld [vmem:[#allocation9 + $0x68] sm:$0xff]  ;;  %v1299_v24 = vshra.s32 %v1295_v18, 16 }
  0xe2   :  { %v833_v42 = vadd.f32 %v832_v30, %v819_v34  ;;  %v859_v31 = vadd.f32 %v858_v6, %v845_v26  ;;  %v998_v34 = vand.u32 2147483647, %v994_v28  ;;  %v1000_v5 = vand.u32 2147483647, %v996_v29 }
  0xe3   :  { %1250 = vmatpush.bf16.msrb.mxu3 %v2031_v4  ;;  %1493 = vmatpush.bf16.msra.mxu1 %v2316_v37  ;;  %v1293_v4 = vand.u32 2147483647, %v1289_v14 }
  0xe4   :  { %v935_v50 = vmax.f32 %v833_v42, 0.0  ;;  %v846_v20 = vpop.f32.mrf.mxu3  ;;  %1278 = vmatpush.bf16.msra.mxu2 %v2035_v19  ;;  %v1002_v40 = vshra.s32 %v998_v34, 16  ;;  %v1004_v41 = vshra.s32 %v1000_v5, 16  ;;  %v1294_v19 = vand.u32 2147483647, %v1290_v16  ;;  %v2321_v34 = vld [vmem:[#allocation9 + $0x50] sm:$0xff] }
  0xe5   :  { %v847_v32 = vadd.f32 %v846_v20, %v205_v17  ;;  %v1292_v17 = vadd.s32 124076833, %v2613_v57  ;;  %v1297_v21 = vshra.s32 %v1293_v4, 16 }
  0xe6   :  { %v1023_v59 = vmul.f32 1.25, %v935_v50  ;;  %v1006_v47 = vxor.u32 %v1002_v40, %v994_v28  ;;  %v1008_v49 = vxor.u32 %v1004_v41, %v996_v29  ;;  %v1303_v28 = vxor.u32 %v1299_v24, %v1291_v15  ;;  %v2320_v40 = vld [vmem:[#allocation9 + $0x48] sm:$0xff] }
  0xe7   :  { %v860_v27 = vpop.f32.mrf.mxu2  ;;  %1505 = vmatpush.bf16.msra.mxu3 %v2326_v60  ;;  %1494 = vmatpush.bf16.msra.mxu1 %v2315_v48  ;;  %v1296_v20 = vand.u32 2147483647, %v1292_v17 }
  0xe8   :  { %v2093_v0 = vpack.c.bf16 %v1023_v59, %v1021_v58  ;;  %v861_v39 = vadd.f32 %v860_v27, %v847_v32  ;;  %v1010_v55 = vand.u32 2147483647, %v1006_v47  ;;  %v1012_v58 = vand.u32 2147483647, %v1008_v49  ;;  %v2319_v47 = vld [vmem:[#allocation9 + $0x40] sm:$0xff] }
  0xe9   :  { %v1300_v26 = vshra.s32 %v1296_v20, 16  ;;  %v1301_v27 = vxor.u32 %v1297_v21, %v1289_v14  ;;  %v1307_v23 = vmul.u32 2246822507, %v1303_v28 }
  0xea   :  { %2094 = vmatmul.msk.bf16.vlgmr.msrb.gmra.mxu1 %vm2092_vm3, %v2093_v0  ;;  %2100 = vmatmul.msk.bf16.vlgmr.msra.gmra.mxu0 %vm2092_vm3, %v2093_v0  ;;  %v1014_v54 = vshra.s32 %v1010_v55, 7  ;;  %v1016_v63 = vshra.s32 %v1012_v58, 7 }
  0xeb   :  { %1506 = vmatpush.bf16.msra.mxu3 %v2325_v9  ;;  %v1305_v32 = vmul.u32 2246822507, %v1301_v27 }
  0xec   :  { %vm1018_vm4 = vcmp.ge.s32.totalorder %v1014_v54, 3355443  ;;  %vm1020_vm5 = vcmp.ge.s32.totalorder %v1016_v63, 3355443 }
  0xed   :  { %vm2095_vm6 = vmpackc.low %vm1020_vm5, %vm1018_vm4  ;;  %v1309_v5 = vand.u32 2147483647, %v1305_v32 }
  0xef   :  { %1507 = vmatpush.bf16.msra.mxu3 %v2324_v44  ;;  %v1313_v41 = vshra.s32 %v1309_v5, 13 }
  0xf1   :  { %v1317_v49 = vxor.u32 %v1313_v41, %v1305_v32  ;;  %v2338_v41 = vld [vmem:[%s2653_s7] ss:$0 sm:$0xff] }
  0xf3   :  { %1508 = vmatpush.bf16.msra.mxu3 %v2323_v13 }
  0xf4   :  { %v872_v25 = vpop.f32.mrf.mxu0 }
  0xf5   :  { %v873_v36 = vadd.f32 %v872_v25, %v859_v31  ;;  %v1298_v25 = vshra.s32 %v1294_v19, 16  ;;  %v2314_v31 = vld [vmem:[#allocation9 + $0x18] sm:$0xff] }
  0xf6   :  { %1495 = vmatpush.bf16.msra.mxu1 %v2314_v31 }
  0xf7   :  { %v886_v30 = vpop.f32.mrf.mxu1  ;;  %v1302_v29 = vxor.u32 %v1298_v25, %v1290_v16  ;;  %1509 = vmatpush.bf16.msra.mxu3 %v2322_v22 }
  0xf8   :  { %v887_v42 = vadd.f32 %v886_v30, %v873_v36  ;;  %v1304_v30 = vxor.u32 %v1300_v26, %v1292_v17 }
  0xf9   :  { %v1306_v56 = vmul.u32 2246822507, %v1302_v29 }
  0xfa   :  { %v1308_v57 = vmul.u32 2246822507, %v1304_v30 }
  0xfb   :  { %1510 = vmatpush.bf16.msra.mxu3 %v2321_v34  ;;  %v1310_v36 = vand.u32 2147483647, %v1306_v56 }
  0xfc   :  { %v900_v33 = vpop.f32.mrf.mxu3  ;;  %v874_v35 = vpop.f32.mrf.mxu0 }
  0xfd   :  { %v875_v43 = vadd.f32 %v874_v35, %v861_v39  ;;  %v901_v46 = vadd.f32 %v900_v33, %v887_v42  ;;  %v2313_v33 = vld [vmem:[#allocation9 + $0x10] sm:$0xff]  ;;  %v1311_v35 = vand.u32 2147483647, %v1307_v23  ;;  %v2312_v39 = vld [vmem:[#allocation9 + $0x8] sm:$0xff] }
  0xfe   :  { %1496 = vmatpush.bf16.msra.mxu1 %v2313_v33 }
  0xff   :  { %v914_v38 = vpop.f32.mrf.mxu2  ;;  %v888_v45 = vpop.f32.mrf.mxu1  ;;  %v1315_v42 = vshra.s32 %v1311_v35, 13  ;;  %1511 = vmatpush.bf16.msra.mxu3 %v2320_v40 }
 0x100   :  { %v889_v12 = vadd.f32 %v888_v45, %v875_v43  ;;  %v915_v52 = vadd.f32 %v914_v38, %v901_v46  ;;  %v1312_v38 = vand.u32 2147483647, %v1308_v57  ;;  %v1314_v43 = vshra.s32 %v1310_v36, 13  ;;  %v2311_v46 = vld [vmem:[#allocation9] sm:$0xff] }
 0x102   :  { %1497 = vmatpush.bf16.msra.mxu1 %v2312_v39  ;;  %v1316_v45 = vshra.s32 %v1312_v38, 13 }
 0x103   :  { %1512 = vmatpush.bf16.msra.mxu3 %v2319_v47 }
 0x104   :  { %v902_v50 = vpop.f32.mrf.mxu3  ;;  %v928_v51 = vpop.f32.mrf.mxu0 }
 0x105   :  { %v903_v53 = vadd.f32 %v902_v50, %v889_v12  ;;  %v929_v10 = vadd.f32 %v928_v51, %v915_v52  ;;  %v1319_v50 = vxor.u32 %v1315_v42, %v1307_v23  ;;  %v1318_v51 = vxor.u32 %v1314_v43, %v1306_v56 }
 0x106   :  { %1498 = vmatpush.bf16.msra.mxu1 %v2311_v46  ;;  %v1320_v12 = vxor.u32 %v1316_v45, %v1308_v57  ;;  %v1321_v52 = vmul.u32 3266489909, %v1317_v49 }
 0x107   :  { %v916_v59 = vpop.f32.mrf.mxu2  ;;  %v934_v62 = vmax.f32 %v929_v10, 0.0  ;;  %v1322_v55 = vmul.u32 3266489909, %v1318_v51 }
 0x108   :  { %v917_v11 = vadd.f32 %v916_v59, %v903_v53  ;;  %v1323_v53 = vmul.u32 3266489909, %v1319_v50  ;;  %v1324_v58 = vmul.u32 3266489909, %v1320_v12  ;;  %v1325_v59 = vand.u32 2147483647, %v1321_v52 }
 0x109   :  { %v1022_v2 = vmul.f32 1.25, %v934_v62 }
 0x10a   :  { %v1327_v10 = vand.u32 2147483647, %v1323_v53  ;;  %v1328_v54 = vand.u32 2147483647, %v1324_v58  ;;  %v1329_v62 = vshra.s32 %v1325_v59, 16 }
 0x10c   :  { %v930_v61 = vpop.f32.mrf.mxu0 }
 0x10d   :  { %v931_v0 = vadd.f32 %v930_v61, %v917_v11  ;;  %v1326_v11 = vand.u32 2147483647, %v1322_v55 }
 0x10f   :  { %v936_v1 = vmax.f32 %v931_v0, 0.0  ;;  %v1331_v0 = vshra.s32 %v1327_v10, 16 }
 0x111   :  { %v1024_v3 = vmul.f32 1.25, %v936_v1  ;;  %v1330_v1 = vshra.s32 %v1326_v11, 16  ;;  %v1335_v7 = vxor.u32 %v1331_v0, %v1323_v53 }
 0x113   :  { %v2096_v6 = vpack.c.bf16 %v1024_v3, %v1022_v2  ;;  %v1332_v2 = vshra.s32 %v1328_v54, 16  ;;  %v1063_v3 = vld [vmem:[%s2651_s5] sm:$0x3]  ;;  %v1334_v9 = vxor.u32 %v1330_v1, %v1322_v55  ;;  %v1339_v14 = vand.u32 2147483647, %v1335_v7 }
 0x114   :  { %v1065_v60 = vperm.slane %v1063_v3, 0  ;;  %v1066_v8 = vperm.slane %v1063_v3, 1 }
 0x115   :  { %2097 = vmatmul.msk.bf16.vlgmr.msrb.gmra.mxu3 %vm2095_vm6, %v2096_v6  ;;  %2103 = vmatmul.msk.bf16.vlgmr.msra.gmra.mxu2 %vm2095_vm6, %v2096_v6  ;;  %v1333_v6 = vxor.u32 %v1329_v62, %v1321_v52  ;;  %v1336_v37 = vxor.u32 %v1332_v2, %v1324_v58  ;;  %v1338_v17 = vand.u32 2147483647, %v1334_v9  ;;  %v1343_v25 = vshra.s32 %v1339_v14, 7 }
 0x117   :  { %v1337_v13 = vand.u32 2147483647, %v1333_v6  ;;  %v1340_v4 = vand.u32 2147483647, %v1336_v37  ;;  %v1342_v28 = vshra.s32 %v1338_v17, 7  ;;  %vm1347_vm8 = vcmp.ge.s32.totalorder %v1343_v25, 8388608 }
 0x119   :  { %v1341_v24 = vshra.s32 %v1337_v13, 7  ;;  %v1344_v29 = vshra.s32 %v1340_v4, 7  ;;  %vm1346_vm9 = vcmp.ge.s32.totalorder %v1342_v28, 8388608 }
 0x11b   :  { %vm1345_vm7 = vcmp.ge.s32.totalorder %v1341_v24, 8388608  ;;  %vm1348_vm10 = vcmp.ge.s32.totalorder %v1344_v29, 8388608 }
 0x11c   :  { %vm2168_vm11 = vmpackc.low %vm1347_vm8, %vm1345_vm7 }
 0x11d   :  { %vm2171_vm12 = vmpackc.low %vm1348_vm10, %vm1346_vm9 }
 0x167   :  { %v1238_v63 = vpop.f32.mrf.mxu1  ;;  %v1266_v61 = vpop.f32.mrf.mxu0 }
 0x168   :  { %v1239_v15 = vadd.f32 %v1238_v63, %v1065_v60  ;;  %v1267_v16 = vadd.f32 %v1266_v61, %v1066_v8 }
 0x16f   :  { %v1240_v18 = vpop.f32.mrf.mxu1  ;;  %v1268_v19 = vpop.f32.mrf.mxu0 }
 0x170   :  { %v1241_v26 = vadd.f32 %v1240_v18, %v1065_v60  ;;  %v1269_v27 = vadd.f32 %v1268_v19, %v1066_v8 }
 0x198   :  { %v1252_v44 = vpop.f32.mrf.mxu3  ;;  %v1280_v48 = vpop.f32.mrf.mxu2 }
 0x199   :  { %v1253_v20 = vadd.f32 %v1252_v44, %v1239_v15  ;;  %v1281_v21 = vadd.f32 %v1280_v48, %v1267_v16 }
 0x19b   :  { %v1285_v22 = vmax.f32 %v1253_v20, 0.0  ;;  %v1286_v32 = vmax.f32 %v1281_v21, 0.0 }
 0x19d   :  { %v1349_v34 = vmul.f32 2.0, %v1285_v22  ;;  %v1350_v5 = vmul.f32 2.0, %v1286_v32 }
 0x1a0   :  { %v1254_v30 = vpop.f32.mrf.mxu3  ;;  %v1282_v31 = vpop.f32.mrf.mxu2 }
 0x1a1   :  { %v1255_v23 = vadd.f32 %v1254_v30, %v1241_v26  ;;  %v1283_v56 = vadd.f32 %v1282_v31, %v1269_v27 }
 0x1a3   :  { %v1287_v57 = vmax.f32 %v1255_v23, 0.0  ;;  %v1288_v33 = vmax.f32 %v1283_v56, 0.0 }
 0x1a5   :  { %v1351_v35 = vmul.f32 2.0, %v1287_v57  ;;  %v1352_v36 = vmul.f32 2.0, %v1288_v33 }
 0x1a7   :  { %v2169_v38 = vpack.c.bf16 %v1351_v35, %v1349_v34  ;;  %v2172_v39 = vpack.c.bf16 %v1352_v36, %v1350_v5 }
 0x1a9   :  { %2170 = vmatmul.msk.bf16.vlgmr.msra.gmra.mxu1 %vm2168_vm11, %v2169_v38  ;;  %2173 = vmatmul.msk.bf16.vlgmr.msra.gmra.mxu3 %vm2171_vm12, %v2172_v39 }
 0x226   :  { %v1500_v40 = vpop.f32.mrf.mxu1 }
 0x227   :  { %v1501_v42 = vadd.f32 %v2338_v41, %v1500_v40 }
 0x22c   :  { %v1514_v43 = vpop.f32.mrf.mxu3 }
 0x22d   :  { %v1515_v45 = vadd.f32 %v1514_v43, %v1501_v42 }
 0x22e   :  { %v1502_v46 = vpop.f32.mrf.mxu1 }
 0x22f   :  { %1519 = vst [vmem:[#allocation11] sm:$0xff] %v1515_v45  ;;  %v1503_v47 = vadd.f32 %v2338_v41, %v1502_v46 }
 0x234   :  { %v1516_v49 = vpop.f32.mrf.mxu3 }
 0x235   :  { %v1517_v50 = vadd.f32 %v1516_v49, %v1503_v47 }
 0x237   :  { %1520 = vst [vmem:[#allocation11 + $0x8] sm:$0xff] %v1517_v50 }
 0x238   :  { %1533 = dma.vmem_to_hbm [thread:$0]  %s1526_s12, 256, %s1528_s2, [#allocation5], %s2468_s13, %s2468_s13, %s2469_s14  }
 0x239   :  { %2465 = dma.done.wait [#allocation5], 256  }
 0x23a   :  { %2466 = vsyncadd [#allocation5], 4294967040 }
 0x23b   :  { %1538 = vsyncpa [#allocation4], 1 }
 0x23c   :  { %1539 = vsyncpa [#allocation7], 1 }
 0x23d   :  { %1540 = vsyncpa [#allocation10], 1 }
 0x23e   :  { %1541 = vsyncpa [#allocation5], 1 }

</bundles_post_ra>
